<compile_context>
chip_gen: v7x
topology: tpu7x:2x2x1
jax: 0.10.0
libtpu: 0.0.40
codegen_flags: <defaults>
</compile_context>

<pallas_src>
import functools
import math

import jax
import jax.numpy as jnp
from jax.experimental import pallas as pl
from jax.experimental.pallas import tpu as pltpu

LANE = 128                # matmul N (Cout) padded to this for the MXU
TARGET_TILE_ROWS = 1024   # ~output pixels (M) per matmul tile


# ----------------------------- Pallas kernel -------------------------------

def _conv_kernel(x_ref, w_ref, b_ref, o_ref, *, kH, kW, sH, sW, TH, Wo, Cout):
    """Fused im2col-free conv for one (batch, row-tile) grid step.

    x_ref : (1, Hp, Wp, Cin)       padded NHWC image of the current batch element (bf16)
    w_ref : (kH*kW, Cin, Npad)     per-tap weight slabs, Npad = Cout padded to 128 (bf16)
    b_ref : (1, Npad)              bias (f32)
    o_ref : (1, Cout, TH*Wo)       NCHW output tile, flattened spatial in lanes (f32)
    """
    i = pl.program_id(1)
    RH = (TH - 1) * sH + kH                          # input rows covered by this tile
    row0 = pl.multiple_of(i * (TH * sH), TH * sH)    # aligned dynamic halo-row slice
    xt = x_ref[0, pl.ds(row0, RH), :, :]             # (RH, Wp, Cin) in VMEM

    Cin = xt.shape[-1]
    Npad = w_ref.shape[-1]

    # Per-tap matmul accumulation (no concat, no materialized big A-tile).
    acc = jnp.zeros((TH * Wo, Npad), jnp.float32)
    for ki in range(kH):
        for kj in range(kW):
            tap = xt[ki:ki + (TH - 1) * sH + 1:sH,
                     kj:kj + (Wo - 1) * sW + 1:sW, :]            # (TH, Wo, Cin)
            a = tap.reshape(TH * Wo, Cin)                        # bf16 A-tile for this tap
            acc = acc + jnp.dot(a, w_ref[ki * kW + kj],
                                preferred_element_type=jnp.float32)

    acc = acc + b_ref[...]                                       # f32 bias epilogue
    # Drop lane padding, transpose to channels-in-sublanes, store NCHW directly.
    res = acc[:, :Cout].T                                        # (Cout, TH*Wo)
    o_ref[...] = res.reshape(1, Cout, TH * Wo).astype(o_ref.dtype)


# ------------------------------ wrappers -----------------------------------

def _vmem_limit_bytes():
    """Generous but generation-safe scoped VMEM limit."""
    try:
        cap = int(pltpu.get_tpu_info().vmem_capacity_bytes)
    except Exception:
        cap = 64 * 1024 * 1024
    return int(min(cap - 8 * 1024 * 1024, 100 * 1024 * 1024))


def _pick_tile_rows(Ho, Wo, target=TARGET_TILE_ROWS):
    """Largest divisor TH of Ho with TH*Wo <= target and TH*Wo a multiple of 128.

    Falls back to TH = Ho (single tile; output block then equals the full array extent,
    which is always a legal BlockSpec). NOTE: the fallback can make a very large tile
    for big images with awkward shapes — that is a perf cliff, not a correctness issue.
    """
    best = None
    for th in range(1, Ho + 1):
        if Ho % th:
            continue
        rows = th * Wo
        if rows <= target and rows % LANE == 0:
            best = th
    return best if best is not None else Ho


def conv2d_pallas(x_nchw, weight, bias, *, stride, padding,
                  compute_dtype=jnp.bfloat16):
    """Conv2d(kH,kW, stride, padding) with torch-layout weight (Cout, Cin, kH, kW)."""
    B, Cin, H, W = x_nchw.shape
    Cout, _, kH, kW = weight.shape
    sH, sW = stride
    pH, pW = padding
    Ho = (H + 2 * pH - kH) // sH + 1
    Wo = (W + 2 * pW - kW) // sW + 1
    Npad = ((Cout + LANE - 1) // LANE) * LANE

    if bias is None:
        bias = jnp.zeros((Cout,), jnp.float32)

    # NHWC, spatially padded, bf16 MXU operands.
    x = jnp.transpose(x_nchw, (0, 2, 3, 1))
    xp = jnp.pad(x, ((0, 0), (pH, pH), (pW, pW), (0, 0))).astype(compute_dtype)
    Hp, Wp = H + 2 * pH, W + 2 * pW

    # (Cout,Cin,kH,kW) -> (kH,kW,Cin,Cout) -> (kH*kW, Cin, Cout), pad Cout to lane width.
    w_taps = jnp.transpose(weight, (2, 3, 1, 0)).reshape(kH * kW, Cin, Cout)
    w_taps = jnp.pad(w_taps, ((0, 0), (0, 0), (0, Npad - Cout))).astype(compute_dtype)
    b_pad = jnp.pad(bias.astype(jnp.float32), (0, Npad - Cout)).reshape(1, Npad)

    TH = _pick_tile_rows(Ho, Wo)
    kern = functools.partial(_conv_kernel,
                             kH=kH, kW=kW, sH=sH, sW=sW, TH=TH, Wo=Wo, Cout=Cout)

    out = pl.pallas_call(
        kern,
        out_shape=jax.ShapeDtypeStruct((B, Cout, Ho * Wo), jnp.float32),
        grid=(B, Ho // TH),
        in_specs=[
            # padded image of batch b stays resident in VMEM across its row tiles
            pl.BlockSpec((1, Hp, Wp, Cin), lambda b, i: (b, 0, 0, 0)),
            pl.BlockSpec((kH * kW, Cin, Npad), lambda b, i: (0, 0, 0)),
            pl.BlockSpec((1, Npad), lambda b, i: (0, 0)),
        ],
        out_specs=pl.BlockSpec((1, Cout, TH * Wo), lambda b, i: (b, 0, i)),
        compiler_params=pltpu.CompilerParams(
            dimension_semantics=("parallel", "parallel"),
            vmem_limit_bytes=_vmem_limit_bytes()),
    )(xp, w_taps, b_pad)

    return out.reshape(B, Cout, Ho, Wo)          # free metadata reshape (already NCHW)


def piggyback_conv_forward(x_nchw, unc_filt, bias, *, task, stride, padding,
                           concat_unc_filter=None, weights_mat=None):
    """Forward pass of PiggybackConv."""
    if task == 1:
        final_w = unc_filt
    else:
        bank = concat_unc_filter                              # (bank_c_out, Cin, kH, kW)
        bank_c_out, Cin, kH, kW = bank.shape
        # torch.reshape semantics: raw row-major reinterpretation (NOT a transpose).
        reshape_unc = bank.reshape(Cin * kH * kW, bank_c_out)
        # Tiny matmul: leave to XLA (fuses into weight prep; a Pallas call here is
        # pure dispatch + HBM round-trip overhead, per review).
        rw = jnp.dot(reshape_unc.astype(jnp.float32),
                     weights_mat.astype(jnp.float32),
                     preferred_element_type=jnp.float32)      # (Cin*kH*kW, lamb_rem)
        pb_filt = rw.reshape(rw.shape[1], Cin, kH, kW)        # raw reshape, as in torch
        final_w = jnp.concatenate([unc_filt, pb_filt], axis=0)
    return conv2d_pallas(x_nchw, final_w, bias, stride=stride, padding=padding)


# ------------------------------ references ---------------------------------

def _conv_ref(x, w, b, stride, padding):
    out = jax.lax.conv_general_dilated(
        x, w, window_strides=stride,
        padding=[(padding[0], padding[0]), (padding[1], padding[1])],
        dimension_numbers=("NCHW", "OIHW", "NCHW"))
    return out + b.reshape(1, -1, 1, 1)


def _final_weight_ref(unc_filt, concat_unc_filter, weights_mat):
    bank = concat_unc_filter
    r = bank.reshape(bank.shape[1] * bank.shape[2] * bank.shape[3], bank.shape[0])
    rw = r @ weights_mat
    pb = rw.reshape(rw.shape[1], bank.shape[1], bank.shape[2], bank.shape[3])
    return jnp.concatenate([unc_filt, pb], axis=0)


# --------------------------------- main -------------------------------------

if __name__ == "__main__":
    key = jax.random.PRNGKey(0)
    B, Cin, H, W = 2, 4, 16, 16
    Cout = 8
    kH = kW = 3
    stride = (1, 1)
    padding = (1, 1)
    lambdas = 0.25
    lamb_num = math.ceil(lambdas * Cout)          # 2
    lamb_rem_num = Cout - lamb_num                # 6

    ks = jax.random.split(key, 8)
    x = jax.random.normal(ks[0], (B, Cin, H, W), jnp.float32)

    # ----------------- task == 1 path -----------------
    unc_filt_t1 = 0.2 * jax.random.normal(ks[1], (Cout, Cin, kH, kW), jnp.float32)
    bias_t1 = 0.1 * jax.random.normal(ks[2], (Cout,), jnp.float32)

    fwd_t1 = jax.jit(functools.partial(
        piggyback_conv_forward, task=1, stride=stride, padding=padding))
    out1 = jax.block_until_ready(fwd_t1(x, unc_filt_t1, bias_t1))

    ref1 = _conv_ref(x, unc_filt_t1, bias_t1, stride, padding)
    assert out1.shape == (B, Cout, H, W), out1.shape
    assert bool(jnp.all(jnp.isfinite(out1)))
    assert bool(jnp.allclose(out1, ref1, atol=5e-2, rtol=5e-2)), \
        float(jnp.max(jnp.abs(out1 - ref1)))

    # ----------------- task == 3 path (filter bank) -----------------
    # previous tasks: task1 had Cout filters, task2 had lamb_num filters
    unc_prev_t1 = 0.2 * jax.random.normal(ks[3], (Cout, Cin, kH, kW), jnp.float32)
    unc_prev_t2 = 0.2 * jax.random.normal(ks[4], (lamb_num, Cin, kH, kW), jnp.float32)
    concat_unc_filter = jnp.concatenate([unc_prev_t1, unc_prev_t2], axis=0)   # (10,Cin,3,3)
    weights_mat = 0.3 * jax.random.normal(
        ks[5], (concat_unc_filter.shape[0], lamb_rem_num), jnp.float32)       # (10, 6)
    unc_filt_t3 = 0.2 * jax.random.normal(ks[6], (lamb_num, Cin, kH, kW), jnp.float32)
    bias_t3 = 0.1 * jax.random.normal(ks[7], (Cout,), jnp.float32)

    fwd_t3 = jax.jit(functools.partial(
        piggyback_conv_forward, task=3, stride=stride, padding=padding))
    out3 = jax.block_until_ready(
        fwd_t3(x, unc_filt_t3, bias_t3,
               concat_unc_filter=concat_unc_filter, weights_mat=weights_mat))

    final_w_ref = _final_weight_ref(unc_filt_t3, concat_unc_filter, weights_mat)
    ref3 = _conv_ref(x, final_w_ref, bias_t3, stride, padding)
    assert out3.shape == (B, Cout, H, W), out3.shape
    assert bool(jnp.all(jnp.isfinite(out3)))
    assert bool(jnp.allclose(out3, ref3, atol=5e-2, rtol=5e-2)), \
        float(jnp.max(jnp.abs(out3 - ref3)))

    print("KERNEL_OK")
</pallas_src>

<mosaic_0001>
module attributes {stable_mosaic.version = 11 : i64} {
  func.func @_conv_kernel(%arg0: i32, %arg1: i32, %arg2: memref<1x18x18x4xbf16, #tpu.memory_space<vmem>>, %arg3: memref<9x4x128xbf16, #tpu.memory_space<vmem>>, %arg4: memref<1x128xf32, #tpu.memory_space<vmem>>, %arg5: memref<1x8x256xf32, #tpu.memory_space<vmem>>) attributes {dimension_semantics = [#tpu.dimension_semantics<parallel>, #tpu.dimension_semantics<parallel>], iteration_bounds = array<i64: 2, 1>, scalar_prefetch = 0 : i64, scratch_operands = 0 : i64, tpu.core_type = #tpu.core_type<tc>, window_params = [{transform_indices = @transform_0, window_bounds = array<i64: 1, 18, 18, 4>}, {pipeline_mode = #tpu.pipeline_mode<synchronous>, transform_indices = @transform_1, window_bounds = array<i64: 9, 4, 128>}, {pipeline_mode = #tpu.pipeline_mode<synchronous>, transform_indices = @transform_2, window_bounds = array<i64: 1, 128>}, {transform_indices = @transform_3, window_bounds = array<i64: 1, 8, 256>}]} {
    %c16_i32 = arith.constant 16 : i32
    %0 = arith.muli %arg1, %c16_i32 : i32
    %1 = tpu.assume_multiple %0, 16 : i32
    %c0 = arith.constant 0 : index
    %2 = arith.index_cast %1 : i32 to index
    %c0_0 = arith.constant 0 : index
    %c0_1 = arith.constant 0 : index
    %3 = vector.load %arg2[%c0, %2, %c0_0, %c0_1] : memref<1x18x18x4xbf16, #tpu.memory_space<vmem>>, vector<1x18x18x4xbf16>
    %4 = vector.shape_cast %3 : vector<1x18x18x4xbf16> to vector<18x18x4xbf16>
    %cst = arith.constant 0.000000e+00 : f32
    %5 = vector.broadcast %cst : f32 to vector<256x128xf32>
    %6 = vector.extract_strided_slice %4 {offsets = [0, 0, 0], sizes = [16, 16, 4], strides = [1, 1, 1]} : vector<18x18x4xbf16> to vector<16x16x4xbf16>
    %7 = vector.shape_cast %6 : vector<16x16x4xbf16> to vector<256x4xbf16>
    %c0_2 = arith.constant 0 : index
    %c0_3 = arith.constant 0 : index
    %c0_4 = arith.constant 0 : index
    %8 = vector.load %arg3[%c0_2, %c0_3, %c0_4] : memref<9x4x128xbf16, #tpu.memory_space<vmem>>, vector<1x4x128xbf16>
    %9 = vector.shape_cast %8 : vector<1x4x128xbf16> to vector<4x128xbf16>
    %cst_5 = arith.constant dense<0.000000e+00> : vector<256x128xf32>
    %10 = tpu.matmul %7, %9, %cst_5 {dimension_numbers = #tpu.dot_dimension_numbers<[1], [0], [0], [1], [0, 0, 1, 1], [], []>} : vector<256x4xbf16>, vector<4x128xbf16>, vector<256x128xf32> -> vector<256x128xf32>
    %11 = arith.addf %5, %10 : vector<256x128xf32>
    %12 = vector.extract_strided_slice %4 {offsets = [0, 1, 0], sizes = [16, 16, 4], strides = [1, 1, 1]} : vector<18x18x4xbf16> to vector<16x16x4xbf16>
    %13 = vector.shape_cast %12 : vector<16x16x4xbf16> to vector<256x4xbf16>
    %c1 = arith.constant 1 : index
    %c0_6 = arith.constant 0 : index
    %c0_7 = arith.constant 0 : index
    %14 = vector.load %arg3[%c1, %c0_6, %c0_7] : memref<9x4x128xbf16, #tpu.memory_space<vmem>>, vector<1x4x128xbf16>
    %15 = vector.shape_cast %14 : vector<1x4x128xbf16> to vector<4x128xbf16>
    %cst_8 = arith.constant dense<0.000000e+00> : vector<256x128xf32>
    %16 = tpu.matmul %13, %15, %cst_8 {dimension_numbers = #tpu.dot_dimension_numbers<[1], [0], [0], [1], [0, 0, 1, 1], [], []>} : vector<256x4xbf16>, vector<4x128xbf16>, vector<256x128xf32> -> vector<256x128xf32>
    %17 = arith.addf %11, %16 : vector<256x128xf32>
    %18 = vector.extract_strided_slice %4 {offsets = [0, 2, 0], sizes = [16, 16, 4], strides = [1, 1, 1]} : vector<18x18x4xbf16> to vector<16x16x4xbf16>
    %19 = vector.shape_cast %18 : vector<16x16x4xbf16> to vector<256x4xbf16>
    %c2 = arith.constant 2 : index
    %c0_9 = arith.constant 0 : index
    %c0_10 = arith.constant 0 : index
    %20 = vector.load %arg3[%c2, %c0_9, %c0_10] : memref<9x4x128xbf16, #tpu.memory_space<vmem>>, vector<1x4x128xbf16>
    %21 = vector.shape_cast %20 : vector<1x4x128xbf16> to vector<4x128xbf16>
    %cst_11 = arith.constant dense<0.000000e+00> : vector<256x128xf32>
    %22 = tpu.matmul %19, %21, %cst_11 {dimension_numbers = #tpu.dot_dimension_numbers<[1], [0], [0], [1], [0, 0, 1, 1], [], []>} : vector<256x4xbf16>, vector<4x128xbf16>, vector<256x128xf32> -> vector<256x128xf32>
    %23 = arith.addf %17, %22 : vector<256x128xf32>
    %24 = vector.extract_strided_slice %4 {offsets = [1, 0, 0], sizes = [16, 16, 4], strides = [1, 1, 1]} : vector<18x18x4xbf16> to vector<16x16x4xbf16>
    %25 = vector.shape_cast %24 : vector<16x16x4xbf16> to vector<256x4xbf16>
    %c3 = arith.constant 3 : index
    %c0_12 = arith.constant 0 : index
    %c0_13 = arith.constant 0 : index
    %26 = vector.load %arg3[%c3, %c0_12, %c0_13] : memref<9x4x128xbf16, #tpu.memory_space<vmem>>, vector<1x4x128xbf16>
    %27 = vector.shape_cast %26 : vector<1x4x128xbf16> to vector<4x128xbf16>
    %cst_14 = arith.constant dense<0.000000e+00> : vector<256x128xf32>
    %28 = tpu.matmul %25, %27, %cst_14 {dimension_numbers = #tpu.dot_dimension_numbers<[1], [0], [0], [1], [0, 0, 1, 1], [], []>} : vector<256x4xbf16>, vector<4x128xbf16>, vector<256x128xf32> -> vector<256x128xf32>
    %29 = arith.addf %23, %28 : vector<256x128xf32>
    %30 = vector.extract_strided_slice %4 {offsets = [1, 1, 0], sizes = [16, 16, 4], strides = [1, 1, 1]} : vector<18x18x4xbf16> to vector<16x16x4xbf16>
    %31 = vector.shape_cast %30 : vector<16x16x4xbf16> to vector<256x4xbf16>
    %c4 = arith.constant 4 : index
    %c0_15 = arith.constant 0 : index
    %c0_16 = arith.constant 0 : index
    %32 = vector.load %arg3[%c4, %c0_15, %c0_16] : memref<9x4x128xbf16, #tpu.memory_space<vmem>>, vector<1x4x128xbf16>
    %33 = vector.shape_cast %32 : vector<1x4x128xbf16> to vector<4x128xbf16>
    %cst_17 = arith.constant dense<0.000000e+00> : vector<256x128xf32>
    %34 = tpu.matmul %31, %33, %cst_17 {dimension_numbers = #tpu.dot_dimension_numbers<[1], [0], [0], [1], [0, 0, 1, 1], [], []>} : vector<256x4xbf16>, vector<4x128xbf16>, vector<256x128xf32> -> vector<256x128xf32>
    %35 = arith.addf %29, %34 : vector<256x128xf32>
    %36 = vector.extract_strided_slice %4 {offsets = [1, 2, 0], sizes = [16, 16, 4], strides = [1, 1, 1]} : vector<18x18x4xbf16> to vector<16x16x4xbf16>
    %37 = vector.shape_cast %36 : vector<16x16x4xbf16> to vector<256x4xbf16>
    %c5 = arith.constant 5 : index
    %c0_18 = arith.constant 0 : index
    %c0_19 = arith.constant 0 : index
    %38 = vector.load %arg3[%c5, %c0_18, %c0_19] : memref<9x4x128xbf16, #tpu.memory_space<vmem>>, vector<1x4x128xbf16>
    %39 = vector.shape_cast %38 : vector<1x4x128xbf16> to vector<4x128xbf16>
    %cst_20 = arith.constant dense<0.000000e+00> : vector<256x128xf32>
    %40 = tpu.matmul %37, %39, %cst_20 {dimension_numbers = #tpu.dot_dimension_numbers<[1], [0], [0], [1], [0, 0, 1, 1], [], []>} : vector<256x4xbf16>, vector<4x128xbf16>, vector<256x128xf32> -> vector<256x128xf32>
    %41 = arith.addf %35, %40 : vector<256x128xf32>
    %42 = vector.extract_strided_slice %4 {offsets = [2, 0, 0], sizes = [16, 16, 4], strides = [1, 1, 1]} : vector<18x18x4xbf16> to vector<16x16x4xbf16>
    %43 = vector.shape_cast %42 : vector<16x16x4xbf16> to vector<256x4xbf16>
    %c6 = arith.constant 6 : index
    %c0_21 = arith.constant 0 : index
    %c0_22 = arith.constant 0 : index
    %44 = vector.load %arg3[%c6, %c0_21, %c0_22] : memref<9x4x128xbf16, #tpu.memory_space<vmem>>, vector<1x4x128xbf16>
    %45 = vector.shape_cast %44 : vector<1x4x128xbf16> to vector<4x128xbf16>
    %cst_23 = arith.constant dense<0.000000e+00> : vector<256x128xf32>
    %46 = tpu.matmul %43, %45, %cst_23 {dimension_numbers = #tpu.dot_dimension_numbers<[1], [0], [0], [1], [0, 0, 1, 1], [], []>} : vector<256x4xbf16>, vector<4x128xbf16>, vector<256x128xf32> -> vector<256x128xf32>
    %47 = arith.addf %41, %46 : vector<256x128xf32>
    %48 = vector.extract_strided_slice %4 {offsets = [2, 1, 0], sizes = [16, 16, 4], strides = [1, 1, 1]} : vector<18x18x4xbf16> to vector<16x16x4xbf16>
    %49 = vector.shape_cast %48 : vector<16x16x4xbf16> to vector<256x4xbf16>
    %c7 = arith.constant 7 : index
    %c0_24 = arith.constant 0 : index
    %c0_25 = arith.constant 0 : index
    %50 = vector.load %arg3[%c7, %c0_24, %c0_25] : memref<9x4x128xbf16, #tpu.memory_space<vmem>>, vector<1x4x128xbf16>
    %51 = vector.shape_cast %50 : vector<1x4x128xbf16> to vector<4x128xbf16>
    %cst_26 = arith.constant dense<0.000000e+00> : vector<256x128xf32>
    %52 = tpu.matmul %49, %51, %cst_26 {dimension_numbers = #tpu.dot_dimension_numbers<[1], [0], [0], [1], [0, 0, 1, 1], [], []>} : vector<256x4xbf16>, vector<4x128xbf16>, vector<256x128xf32> -> vector<256x128xf32>
    %53 = arith.addf %47, %52 : vector<256x128xf32>
    %54 = vector.extract_strided_slice %4 {offsets = [2, 2, 0], sizes = [16, 16, 4], strides = [1, 1, 1]} : vector<18x18x4xbf16> to vector<16x16x4xbf16>
    %55 = vector.shape_cast %54 : vector<16x16x4xbf16> to vector<256x4xbf16>
    %c8 = arith.constant 8 : index
    %c0_27 = arith.constant 0 : index
    %c0_28 = arith.constant 0 : index
    %56 = vector.load %arg3[%c8, %c0_27, %c0_28] : memref<9x4x128xbf16, #tpu.memory_space<vmem>>, vector<1x4x128xbf16>
    %57 = vector.shape_cast %56 : vector<1x4x128xbf16> to vector<4x128xbf16>
    %cst_29 = arith.constant dense<0.000000e+00> : vector<256x128xf32>
    %58 = tpu.matmul %55, %57, %cst_29 {dimension_numbers = #tpu.dot_dimension_numbers<[1], [0], [0], [1], [0, 0, 1, 1], [], []>} : vector<256x4xbf16>, vector<4x128xbf16>, vector<256x128xf32> -> vector<256x128xf32>
    %59 = arith.addf %53, %58 : vector<256x128xf32>
    %c0_30 = arith.constant 0 : index
    %c0_31 = arith.constant 0 : index
    %60 = vector.load %arg4[%c0_30, %c0_31] : memref<1x128xf32, #tpu.memory_space<vmem>>, vector<1x128xf32>
    %61 = vector.broadcast %60 : vector<1x128xf32> to vector<256x128xf32>
    %62 = arith.addf %59, %61 : vector<256x128xf32>
    %63 = vector.extract_strided_slice %62 {offsets = [0, 0], sizes = [256, 8], strides = [1, 1]} : vector<256x128xf32> to vector<256x8xf32>
    %64 = tpu.transpose %63, [1, 0] : vector<256x8xf32> -> vector<8x256xf32>
    %65 = vector.shape_cast %64 : vector<8x256xf32> to vector<1x8x256xf32>
    %c0_32 = arith.constant 0 : index
    %c0_33 = arith.constant 0 : index
    %c0_34 = arith.constant 0 : index
    %66 = vector.load %arg5[%c0_32, %c0_33, %c0_34] : memref<1x8x256xf32, #tpu.memory_space<vmem>>, vector<1x8x256xf32>
    tpu.vector_store %arg5[%c0_32, %c0_33, %c0_34], %65 {strides = array<i32>} : memref<1x8x256xf32, #tpu.memory_space<vmem>>, vector<1x8x256xf32>,
    return
  }
  func.func @transform_0(%arg0: i32, %arg1: i32) -> (i32, i32, i32, i32) {
    %c0_i32 = arith.constant 0 : i32
    %c0_i32_0 = arith.constant 0 : i32
    %c0_i32_1 = arith.constant 0 : i32
    %c0_i32_2 = arith.constant 0 : i32
    return %arg0, %c0_i32, %c0_i32_0, %c0_i32_1 : i32, i32, i32, i32
  }
  func.func @transform_1(%arg0: i32, %arg1: i32) -> (i32, i32, i32) {
    %c0_i32 = arith.constant 0 : i32
    %c0_i32_0 = arith.constant 0 : i32
    %c0_i32_1 = arith.constant 0 : i32
    %c0_i32_2 = arith.constant 0 : i32
    return %c0_i32, %c0_i32_0, %c0_i32_1 : i32, i32, i32
  }
  func.func @transform_2(%arg0: i32, %arg1: i32) -> (i32, i32) {
    %c0_i32 = arith.constant 0 : i32
    %c0_i32_0 = arith.constant 0 : i32
    %c0_i32_1 = arith.constant 0 : i32
    return %c0_i32, %c0_i32_0 : i32, i32
  }
  func.func @transform_3(%arg0: i32, %arg1: i32) -> (i32, i32, i32) {
    %c0_i32 = arith.constant 0 : i32
    %c0_i32_0 = arith.constant 0 : i32
    return %arg0, %c0_i32, %arg1 : i32, i32, i32
  }
}

</mosaic_0001>

<bundles_post_ra>
// kernel: piggyback_conv_forward.1
= control target key start
LH: loop header
LB: loop body
LE: loop exit
PB: predicated region body
PF: predicated region fallthrough
CT: control target
= control target key end

     0   :  { %s4156_s12 = smov 0   ;;  %s4158_s13 = smov 0   ;;  %s5191_s0 = inlined_call_operand.vmem [shape: bf16[2,18,18,4], index: 0, kind: input, shape index: {}]   ;;  %s5192_s1 = inlined_call_operand.vmem [shape: bf16[9,4,128], index: 1, kind: input, shape index: {}]   ;;  %s5193_s2 = inlined_call_operand.vmem [shape: f32[1,128], index: 2, kind: input, shape index: {}]   ;;  %s5194_s3 = inlined_call_operand.vmem [shape: f32[2,8,256], index: 3, kind: output, shape index: {}]  }
   0x1   :  { %s4160_s14 = smov 0  }
   0x2 LB: > { %s25_s15 = sadd.s32 1, %s4130_s13  ;;  %p3106_p0 = scmp.ge.s32.totalorder %s4134_s14, 1  ;;  %s4134_s14 = sphi %s4160_s14, %s13_s14   ;;  %s4130_s13 = sphi %s4158_s13, %s5273_s13   ;;  %s4126_s12 = sphi %s4156_s12, %s5272_s12  }
   0x3   : > { %p27_p1 = scmp.ge.s32.totalorder %s25_s15, 2  ;;  %p151_p2 = scmp.lt.s32.totalorder %s4134_s14, 3 }
   0x5   : > { %s5275_s15 = smov (%p27_p1, %s25_s15), 0  ;;  %p152_p3 = pnand %p3106_p0, %p151_p2 }
   0x7   : > { %155 = sbr.rel (%p152_p3) target bundleno = 655 (0x28f), region = 32 }
   0xe   : > { %v3110_v0 = vld [vmem:[%s5192_s1 + $0x2] sm:$0x3]  ;;  %vm740_vm0 = vcmask 1041408   ;;  %v3242_v1 = vld [vmem:[%s5192_s1 + $0x8] sm:$0x3]  ;;  %p179_p4 = scmp.lt.s32.totalorder %s4126_s12, 1 }
   0xf   : > { %4055 = vmatprep.subr.msk.bf16.mxu1 %vm740_vm0, %v3110_v0  ;;  %4059 = vmatprep.subr.msk.bf16.mxu0 %vm740_vm0, %v3242_v1  ;;  %v742_v2 = vsel %vm740_vm0, %v3110_v0, 0  ;;  %v4184_v3 = vsel %vm740_vm0, %v3242_v1, 0  ;;  %v253_v4 = vld [vmem:[%s5192_s1] sm:$0x3]  ;;  %v3261_v5 = vld [vmem:[%s5192_s1 + $0xa] sm:$0x3] }
  0x10   : > { %5226 = vst [vmem:[#allocation2_spill] sm:$0xff] %v4184_v3  ;;  %3492 = vmatpush3.bf16.msra.mxu1 %v742_v2  ;;  %3628 = vmatpush3.bf16.msra.mxu0 %v4184_v3  ;;  %s5277_s12 = smov (!%p179_p4, %s4126_s12), 1  ;;  %vm254_vm1 = vsmask.f32 3328  ;;  %vm255_vm2 = vsmask.f32 7440 }
  0x11   : > { %4056 = vmatprep.subr.msk.bf16.mxu1 %vm740_vm0, %v253_v4  ;;  %4061 = vmatprep.subr.msk.bf16.mxu0 %vm740_vm0, %v3261_v5  ;;  %s4065_s24 = smul.u32 216, %s5277_s12  ;;  %v4204_v6 = vsel %vm740_vm0, %v253_v4, 0  ;;  %v4207_v7 = vsel %vm740_vm0, %v3261_v5, 0  ;;  %v4212_v8 = vld [vmem:[%s5192_s1 + $0xc] sm:$0x3]  ;;  %vm691_vm3 = vcmask 31744   ;;  %vm4248_vm4 = vmor %vm254_vm1, %vm255_vm2 }
  0x12   : > { %v4236_v20 = vsel %vm740_vm0, %v4212_v8, 0  ;;  %vm1213_vm5 = vcmask 1042432   ;;  %vm1214_vm6 = vcmask 1046532   ;;  %s3337_s19 = sshll.u32 %s5277_s12, 4 }
  0x13   : > { %s4201_s27 = scalar_lea.vmem %s5191_s0, %s4065_s24  ;;  %vm4429_vm7 = vmor %vm1213_vm5, %vm1214_vm6  ;;  %s192_s22 = scalar_lea.vmem %s5194_s3, %s3337_s19 }
  0x14   : > { %v4215_v9 = vld [vmem:[%s4201_s27] sm:$0xf]  ;;  %v4218_v10 = vld [vmem:[%s4201_s27 + $0x4] sm:$0xf]  ;;  %v201_v11 = vld [vmem:[%s4201_s27 + $0x8] sm:$0x1] }
  0x15   : > { %v258_v12 = vshrl.u32 %v4215_v9, 16  ;;  %v261_v13 = vshll.u32 %v4215_v9, 16  ;;  %v267_v14 = vshll.u32 %v4218_v10, 16  ;;  %v271_v15 = vshrl.u32 %v4218_v10, 16  ;;  %v4226_v16 = vld [vmem:[%s4201_s27 + $0xc] sm:$0xf] }
  0x16   : > { %v277_v17 = vshll.u32 %v201_v11, 16  ;;  %v4229_v18 = vld [vmem:[%s4201_s27 + $0x10] sm:$0xf]  ;;  %v4232_v19 = vld [vmem:[%s4201_s27 + $0x14] sm:$0x1]  ;;  %v282_v26 = vshrl.u32 %v4226_v16, 16 }
  0x17   : > { %v260_v21 = vrot.slane %v258_v12, 4  ;;  %v263_v22 = vrot.slane %v261_v13, 5  ;;  %v269_v23 = vrot.slane %v267_v14, 5  ;;  %v273_v24 = vrot.slane %v271_v15, 4  ;;  %v4244_v33 = vld [vmem:[%s4201_s27 + $0x18] sm:$0xf] }
  0x18   : > { %v279_v25 = vrot.slane %v277_v17, 5  ;;  %v285_v27 = vshll.u32 %v4226_v16, 16  ;;  %v291_v28 = vshll.u32 %v4229_v18, 16  ;;  %v295_v31 = vshrl.u32 %v4229_v18, 16  ;;  %v4257_v39 = vld [vmem:[%s4201_s27 + $0x1c] sm:$0xf] }
  0x19   : > { %v264_v29 = vor.u32 %v263_v22, %v260_v21  ;;  %v274_v30 = vor.u32 %v273_v24, %v269_v23  ;;  %v301_v32 = vshll.u32 %v4232_v19, 16  ;;  %v284_v35 = vrot.slane %v282_v26, 4  ;;  %v4261_v46 = vld [vmem:[%s4201_s27 + $0x20] sm:$0x1]  ;;  %v4271_v57 = vld [vmem:[%s4201_s27 + $0x24] sm:$0xf] }
  0x1a   : > { %v287_v36 = vrot.slane %v285_v27, 5  ;;  %v293_v37 = vrot.slane %v291_v28, 5  ;;  %v4254_v38 = vcombine.low %v4226_v16, %v4229_v18  ;;  %v297_v42 = vrot.slane %v295_v31, 4  ;;  %v4276_v62 = vld [vmem:[%s4201_s27 + $0x28] sm:$0xf] }
  0x1b   : > { %v265_v40 = vrot.slane %v264_v29, 4  ;;  %v275_v41 = vrot.slane %v274_v30, 4  ;;  %v303_v43 = vrot.slane %v301_v32, 5  ;;  %v1228_v45 = vrot.slane %v4232_v19, 5  ;;  %v4284_v4 = vld [vmem:[%s4201_s27 + $0x2c] sm:$0x1] }
  0x1c   : > { %v288_v44 = vor.u32 %v287_v36, %v284_v35  ;;  %v306_v47 = vshrl.u32 %v4244_v33, 16  ;;  %v309_v48 = vshll.u32 %v4244_v33, 16  ;;  %v298_v51 = vor.u32 %v297_v42, %v293_v37  ;;  %v4290_v14 = vld [vmem:[%s4201_s27 + $0x30] sm:$0xf]  ;;  %v4302_v28 = vld [vmem:[%s4201_s27 + $0x34] sm:$0xf] }
  0x1d   : > { %v270_v49 = vsel %vm4248_vm4, %v265_v40, %v269_v23  ;;  %v280_v50 = vsel %vm4248_vm4, %v275_v41, %v279_v25  ;;  %v315_v52 = vshll.u32 %v4257_v39, 16  ;;  %v319_v60 = vshrl.u32 %v4257_v39, 16  ;;  %v4297_v23 = vld [vmem:[%s5192_s1 + $0x4] sm:$0x3]  ;;  %v4309_v32 = vld [vmem:[%s4201_s27 + $0x38] sm:$0x1] }
  0x1e   : > { %v3111_v53 = vcombine.low %v270_v49, %v280_v50  ;;  %v289_v54 = vrot.slane %v288_v44, 4  ;;  %v308_v55 = vrot.slane %v306_v47, 4  ;;  %v311_v56 = vrot.slane %v309_v48, 5  ;;  %v4317_v48 = vld [vmem:[%s4201_s27 + $0x3c] sm:$0xf] }
  0x1f   : > { %v299_v58 = vrot.slane %v298_v51, 4  ;;  %v317_v59 = vrot.slane %v315_v52, 5  ;;  %v325_v61 = vshll.u32 %v4261_v46, 16  ;;  %v1232_v1 = vrot.slane %v4257_v39, 5  ;;  %v4325_v52 = vld [vmem:[%s4201_s27 + $0x40] sm:$0xf] }
  0x20   : > { %3493 = vmatprep.mubr.msk.bf16.mxu1 %vm691_vm3, %v3111_v53  ;;  %v294_v63 = vsel %vm4248_vm4, %v289_v54, %v293_v37  ;;  %v312_v0 = vor.u32 %v311_v56, %v308_v55  ;;  %v1235_v2 = vrot.slane %v4261_v46, 5  ;;  %v321_v11 = vrot.slane %v319_v60, 4 }
  0x21   : > { %v304_v5 = vsel %vm4248_vm4, %v299_v58, %v303_v43  ;;  %v327_v12 = vrot.slane %v325_v61, 5  ;;  %v330_v13 = vshrl.u32 %v4271_v57, 16  ;;  %v333_v21 = vshll.u32 %v4271_v57, 16 }
  0x22   : > { %v3112_v15 = vcombine.low %v294_v63, %v304_v5  ;;  %v313_v17 = vrot.slane %v312_v0, 4  ;;  %v339_v22 = vshll.u32 %v4276_v62, 16  ;;  %v322_v24 = vor.u32 %v321_v11, %v317_v59  ;;  %v4337_v5 = vld [vmem:[%s4201_s27 + $0x44] sm:$0x1] }
  0x23   : > { %v332_v25 = vrot.slane %v330_v13, 4  ;;  %v343_v26 = vshrl.u32 %v4276_v62, 16  ;;  %v349_v27 = vshll.u32 %v4284_v4, 16  ;;  %v335_v30 = vrot.slane %v333_v21, 5  ;;  %v4342_v13 = vld [vmem:[%s4201_s27 + $0x48] sm:$0xf] }
  0x24   : > { %3629 = vmatprep.mubr.msk.bf16.mxu0 %vm691_vm3, %v3112_v15  ;;  %3494 = vmatmul.mubr.msk.bf16.vlgmr.msra.gmra.mrb[0].mxu1 %vm691_vm3, %v3112_v15  ;;  %v318_v29 = vsel %vm4248_vm4, %v313_v17, %v317_v59  ;;  %v341_v31 = vrot.slane %v339_v22, 5  ;;  %v354_v35 = vshrl.u32 %v4290_v14, 16  ;;  %v323_v36 = vrot.slane %v322_v24, 4  ;;  %v4349_v24 = vld [vmem:[%s4201_s27 + $0x4c] sm:$0xf] }
  0x25   : > { %3526 = vmatpush3.bf16.msra.mxu1 %v4204_v6  ;;  %v345_v37 = vrot.slane %v343_v26, 4  ;;  %v351_v40 = vrot.slane %v349_v27, 5  ;;  %v357_v41 = vshll.u32 %v4290_v14, 16  ;;  %v336_v42 = vor.u32 %v335_v30, %v332_v25 }
  0x26   : > { %v356_v43 = vrot.slane %v354_v35, 4  ;;  %v363_v44 = vshll.u32 %v4302_v28, 16  ;;  %v367_v47 = vshrl.u32 %v4302_v28, 16  ;;  %4057 = vmatprep.subr.msk.bf16.mxu1 %vm740_vm0, %v4297_v23  ;;  %v328_v49 = vsel %vm4248_vm4, %v323_v36, %v327_v12 }
  0x27   : > { %v346_v6 = vor.u32 %v345_v37, %v341_v31  ;;  %v359_v50 = vrot.slane %v357_v41, 5  ;;  %v373_v51 = vshll.u32 %v4309_v32, 16  ;;  %v4327_v53 = vcombine.low %v318_v29, %v328_v49 }
  0x28   : > { %v337_v54 = vrot.slane %v336_v42, 4  ;;  %v365_v55 = vrot.slane %v363_v44, 5  ;;  %v369_v56 = vrot.slane %v367_v47, 4  ;;  %v378_v61 = vshrl.u32 %v4317_v48, 16  ;;  %v4371_v42 = vld [vmem:[%s4201_s27 + $0x54] sm:$0xf] }
  0x29   : > { %5229 = vst [vmem:[#allocation3_spill] sm:$0xff] %v4327_v53  ;;  %v347_v58 = vrot.slane %v346_v6, 4  ;;  %v360_v59 = vor.u32 %v359_v50, %v356_v43  ;;  %v375_v60 = vrot.slane %v373_v51, 5  ;;  %3630 = vmatmul.mubr.msk.bf16.vlgmr.msra.gmra.mrb[0].mxu0 %vm691_vm3, %v4327_v53  ;;  %3497 = vmatprep.mubr.msk.bf16.mxu1 %vm691_vm3, %v4327_v53  ;;  %v381_v11 = vshll.u32 %v4317_v48, 16  ;;  %5231 = vst [vmem:[#allocation5_spill] sm:$0xff] %v4371_v42 }
  0x2a   : > { %v342_v63 = vsel %vm4248_vm4, %v337_v54, %v341_v31  ;;  %v370_v0 = vor.u32 %v369_v56, %v365_v55  ;;  %v387_v12 = vshll.u32 %v4325_v52, 16  ;;  %3662 = vmatpush3.bf16.msra.mxu0 %v4207_v7  ;;  %v380_v21 = vrot.slane %v378_v61, 4  ;;  %v4376_v6 = vld [vmem:[%s4201_s27 + $0x58] sm:$0xf] }
  0x2b   : > { %v352_v15 = vsel %vm4248_vm4, %v347_v58, %v351_v40  ;;  %v361_v17 = vrot.slane %v360_v59, 4  ;;  %v391_v22 = vshrl.u32 %v4325_v52, 16  ;;  %v383_v27 = vrot.slane %v381_v11, 5  ;;  %4062 = vmatprep.subr.msk.bf16.mxu0 %vm740_vm0, %v4212_v8  ;;  %v4366_v8 = vld [vmem:[%s4201_s27 + $0x50] sm:$0x1] }
  0x2c   : > { %v4351_v25 = vcombine.low %v342_v63, %v352_v15  ;;  %v371_v26 = vrot.slane %v370_v0, 4  ;;  %v389_v29 = vrot.slane %v387_v12, 5  ;;  %v397_v31 = vshll.u32 %v4337_v5, 16  ;;  %v4389_v11 = vld [vmem:[%s4201_s27 + $0x5c] sm:$0x1] }
  0x2d   : > { %v366_v7 = vsel %vm4248_vm4, %v361_v17, %v365_v55  ;;  %v393_v30 = vrot.slane %v391_v22, 4  ;;  %v402_v35 = vshrl.u32 %v4342_v13, 16  ;;  %v384_v37 = vor.u32 %v383_v27, %v380_v21  ;;  %v4393_v15 = vld [vmem:[%s4201_s27 + $0x60] sm:$0xf]  ;;  %v4398_v27 = vld [vmem:[%s4201_s27 + $0x64] sm:$0xf] }
  0x2e   : > { %5230 = vst [vmem:[#allocation4_spill] sm:$0xff] %v4351_v25  ;;  %3633 = vmatprep.mubr.msk.bf16.mxu0 %vm691_vm3, %v4351_v25  ;;  %3498 = vmatmul.mubr.msk.bf16.gmra.mrb[4].mxu1 %vm691_vm3, %v4351_v25  ;;  %v376_v36 = vsel %vm4248_vm4, %v371_v26, %v375_v60  ;;  %v405_v40 = vshll.u32 %v4342_v13, 16  ;;  %v411_v41 = vshll.u32 %v4349_v24, 16  ;;  %v399_v47 = vrot.slane %v397_v31, 5  ;;  %v4610_v25 = vld [vmem:[%s4201_s27 + $0xa8] sm:$0xf] }
  0x2f   : > { %v4373_v43 = vcombine.low %v366_v7, %v376_v36  ;;  %v394_v44 = vor.u32 %v393_v30, %v389_v29  ;;  %v404_v49 = vrot.slane %v402_v35, 4  ;;  %v385_v50 = vrot.slane %v384_v37, 4 }
  0x30   : > { %v407_v51 = vrot.slane %v405_v40, 5  ;;  %v413_v54 = vrot.slane %v411_v41, 5  ;;  %v415_v55 = vshrl.u32 %v4349_v24, 16  ;;  %v421_v58 = vshll.u32 %v4366_v8, 16 }
  0x31   : > { %5232 = vst [vmem:[#allocation6_spill] sm:$0xff] %v4373_v43  ;;  %3501 = vmatprep.mubr.msk.bf16.mxu1 %vm691_vm3, %v4373_v43  ;;  %v395_v56 = vrot.slane %v394_v44, 4  ;;  %v426_v59 = vshrl.u32 %v4371_v42, 16  ;;  %v429_v60 = vshll.u32 %v4371_v42, 16  ;;  %3634 = vmatmul.mubr.msk.bf16.gmra.mrb[4].mxu0 %vm691_vm3, %v4373_v43  ;;  %v390_v61 = vsel %vm4248_vm4, %v385_v50, %v389_v29 }
  0x32   : > { %v408_v63 = vor.u32 %v407_v51, %v404_v49  ;;  %v417_v0 = vrot.slane %v415_v55, 4  ;;  %v435_v12 = vshll.u32 %v4376_v6, 16  ;;  %v423_v21 = vrot.slane %v421_v58, 5 }
  0x33   : > { %v400_v17 = vsel %vm4248_vm4, %v395_v56, %v399_v47  ;;  %v428_v22 = vrot.slane %v426_v59, 4  ;;  %v431_v26 = vrot.slane %v429_v60, 5  ;;  %v439_v36 = vshrl.u32 %v4376_v6, 16  ;;  %v4412_v47 = vld [vmem:[%s4201_s27 + $0x68] sm:$0x1] }
  0x34   : > { %v4400_v7 = vcombine.low %v390_v61, %v400_v17  ;;  %v409_v29 = vrot.slane %v408_v63, 4  ;;  %v418_v30 = vor.u32 %v417_v0, %v413_v54  ;;  %v437_v31 = vrot.slane %v435_v12, 5 }
  0x35   : > { %v432_v35 = vor.u32 %v431_v26, %v428_v22  ;;  %v445_v37 = vshll.u32 %v4389_v11, 16  ;;  %v450_v40 = vshrl.u32 %v4393_v15, 16  ;;  %v453_v49 = vshll.u32 %v4393_v15, 16 }
  0x36   : > { %5233 = vst [vmem:[#allocation7_spill] sm:$0xff] %v4400_v7  ;;  %3637 = vmatprep.mubr.msk.bf16.mxu0 %vm691_vm3, %v4400_v7  ;;  %3502 = vmatmul.mubr.msk.bf16.gmra.mrb[8].mxu1 %vm691_vm3, %v4400_v7  ;;  %v414_v41 = vsel %vm4248_vm4, %v409_v29, %v413_v54  ;;  %v419_v44 = vrot.slane %v418_v30, 4  ;;  %v459_v50 = vshll.u32 %v4398_v27, 16  ;;  %v441_v55 = vrot.slane %v439_v36, 4  ;;  %v4420_v54 = vld [vmem:[%s4201_s27 + $0x6c] sm:$0xf] }
  0x37   : > { %v433_v51 = vrot.slane %v432_v35, 4  ;;  %v447_v56 = vrot.slane %v445_v37, 5  ;;  %v452_v58 = vrot.slane %v450_v40, 4  ;;  %v455_v60 = vrot.slane %v453_v49, 5  ;;  %v4436_v36 = vld [vmem:[%s4201_s27 + $0x70] sm:$0xf] }
  0x38   : > { %v424_v59 = vsel %vm4248_vm4, %v419_v44, %v423_v21  ;;  %v461_v61 = vrot.slane %v459_v50, 5  ;;  %v463_v63 = vshrl.u32 %v4398_v27, 16  ;;  %v442_v17 = vor.u32 %v441_v55, %v437_v31  ;;  %v4587_v7 = vld [vmem:[%s4201_s27 + $0xa0] sm:$0xf] }
  0x39   : > { %v4422_v0 = vcombine.low %v414_v41, %v424_v59  ;;  %v438_v12 = vsel %vm4248_vm4, %v433_v51, %v437_v31  ;;  %v469_v22 = vshll.u32 %v4412_v47, 16  ;;  %v456_v21 = vor.u32 %v455_v60, %v452_v58  ;;  %v4449_v51 = vld [vmem:[%s4201_s27 + $0x74] sm:$0x1] }
  0x3a   : > { %v465_v29 = vrot.slane %v463_v63, 4  ;;  %v3176_v30 = vrot.slane %v4226_v16, 9  ;;  %v1225_v35 = vrot.slane %v4229_v18, 5  ;;  %v443_v31 = vrot.slane %v442_v17, 4 }
  0x3b   : > { %5234 = vst [vmem:[#allocation8_spill] sm:$0xff] %v4422_v0  ;;  %3638 = vmatmul.mubr.msk.bf16.gmra.mrb[8].mxu0 %vm691_vm3, %v4422_v0  ;;  %3505 = vmatprep.mubr.msk.bf16.mxu1 %vm691_vm3, %v4422_v0  ;;  %v471_v37 = vrot.slane %v469_v22, 5  ;;  %v474_v40 = vshrl.u32 %v4420_v54, 16  ;;  %v477_v41 = vshll.u32 %v4420_v54, 16  ;;  %v457_v44 = vrot.slane %v456_v21, 4 }
  0x3c   : > { %v466_v49 = vor.u32 %v465_v29, %v461_v61  ;;  %v1226_v16 = vsel %vm4429_vm7, %v3176_v30, %v1225_v35  ;;  %v1227_v18 = vrot.slane %v1225_v35, 4  ;;  %v448_v50 = vsel %vm4248_vm4, %v443_v31, %v447_v56  ;;  %v4461_v56 = vld [vmem:[%s4201_s27 + $0x78] sm:$0xf]  ;;  %v4477_v31 = vld [vmem:[%s4201_s27 + $0x7c] sm:$0xf] }
  0x3d   : > { %v476_v55 = vrot.slane %v474_v40, 4  ;;  %v479_v58 = vrot.slane %v477_v41, 5  ;;  %v483_v59 = vshll.u32 %v4436_v36, 16  ;;  %v4452_v60 = vcombine.low %v438_v12, %v448_v50 }
  0x3e   : > { %v462_v63 = vsel %vm4248_vm4, %v457_v44, %v461_v61  ;;  %v467_v17 = vrot.slane %v466_v49, 4  ;;  %v1229_v22 = vsel %vm4429_vm7, %v1227_v18, %v1228_v45  ;;  %v487_v35 = vshrl.u32 %v4436_v36, 16  ;;  %v4482_v49 = vld [vmem:[%s4201_s27 + $0x80] sm:$0x1] }
  0x3f   : > { %5237 = vst [vmem:[#allocation9_spill] sm:$0xff] %v4452_v60  ;;  %v4463_v21 = vcombine.low %v1226_v16, %v1229_v22  ;;  %v480_v29 = vor.u32 %v479_v58, %v476_v55  ;;  %v485_v30 = vrot.slane %v483_v59, 5  ;;  %3641 = vmatprep.mubr.msk.bf16.mxu0 %vm691_vm3, %v4452_v60  ;;  %3506 = vmatmul.mubr.msk.bf16.gmra.mrb[12].mxu1 %vm691_vm3, %v4452_v60  ;;  %v493_v45 = vshll.u32 %v4449_v51, 16  ;;  %v4580_v60 = vld [vmem:[%s4201_s27 + $0x9c] sm:$0xf] }
  0x40   : > { %v472_v19 = vsel %vm4248_vm4, %v467_v17, %v471_v37  ;;  %v3177_v61 = vrot.slane %v4244_v33, 9  ;;  %v1234_v12 = vrot.slane %v1232_v1, 4  ;;  %v489_v44 = vrot.slane %v487_v35, 4 }
  0x41   : > { %5238 = vst [vmem:[#allocation10_spill] sm:$0xff] %v4463_v21  ;;  %v4479_v40 = vcombine.low %v462_v63, %v472_v19  ;;  %v481_v41 = vrot.slane %v480_v29, 4  ;;  %v498_v16 = vshrl.u32 %v4461_v56, 16  ;;  %v495_v18 = vrot.slane %v493_v45, 5  ;;  %v4508_v29 = vld [vmem:[%s4201_s27 + $0x84] sm:$0xf] }
  0x42   : > { %v1233_v37 = vsel %vm4429_vm7, %v3177_v61, %v1232_v1  ;;  %v1236_v50 = vsel %vm4429_vm7, %v1234_v12, %v1235_v2  ;;  %v501_v55 = vshll.u32 %v4461_v56, 16  ;;  %v490_v59 = vor.u32 %v489_v44, %v485_v30 }
  0x43   : > { %5239 = vst [vmem:[#allocation11_spill] sm:$0xff] %v4479_v40  ;;  %3642 = vmatmul.mubr.msk.bf16.gmra.mrb[12].mxu0 %vm691_vm3, %v4479_v40  ;;  %3509 = vmatprep.mubr.msk.bf16.mxu1 %vm691_vm3, %v4479_v40  ;;  %v486_v58 = vsel %vm4248_vm4, %v481_v41, %v485_v30  ;;  %v4500_v63 = vcombine.low %v1233_v37, %v1236_v50  ;;  %v500_v1 = vrot.slane %v498_v16, 4  ;;  %v507_v2 = vshll.u32 %v4477_v31, 16  ;;  %v4514_v16 = vld [vmem:[%s4201_s27 + $0x88] sm:$0xf] }
  0x44   : > { %3663 = vmatprep.mubr.msk.bf16.mxu0 %vm691_vm3, %v4463_v21  ;;  %v503_v46 = vrot.slane %v501_v55, 5  ;;  %v511_v17 = vshrl.u32 %v4477_v31, 16  ;;  %v517_v22 = vshll.u32 %v4482_v49, 16  ;;  %v491_v35 = vrot.slane %v490_v59, 4 }
  0x45   : > { %5240 = vst [vmem:[#allocation12_spill] sm:$0xff] %v4500_v63  ;;  %v3178_v30 = vrot.slane %v4271_v57, 9  ;;  %v1239_v19 = vrot.slane %v4276_v62, 5  ;;  %v1242_v45 = vrot.slane %v4284_v4, 5  ;;  %v509_v12 = vrot.slane %v507_v2, 5 }
  0x46   : > { %v504_v61 = vor.u32 %v503_v46, %v500_v1  ;;  %v513_v41 = vrot.slane %v511_v17, 4  ;;  %v519_v44 = vrot.slane %v517_v22, 5  ;;  %v496_v37 = vsel %vm4248_vm4, %v491_v35, %v495_v18  ;;  %v4524_v1 = vld [vmem:[%s4201_s27 + $0x8c] sm:$0x1] }
  0x47   : > { %v1240_v50 = vsel %vm4429_vm7, %v3178_v30, %v1239_v19  ;;  %v1241_v55 = vrot.slane %v1239_v19, 4  ;;  %v522_v59 = vshrl.u32 %v4508_v29, 16  ;;  %v4521_v3 = vcombine.low %v486_v58, %v496_v37 }
  0x48   : > { %v505_v40 = vrot.slane %v504_v61, 4  ;;  %v514_v4 = vor.u32 %v513_v41, %v509_v12  ;;  %v525_v46 = vshll.u32 %v4508_v29, 16  ;;  %v531_v18 = vshll.u32 %v4514_v16, 16  ;;  %v4538_v61 = vld [vmem:[%s4201_s27 + $0x90] sm:$0xf] }
  0x49   : > { %5241 = vst [vmem:[#allocation13_spill] sm:$0xff] %v4521_v3  ;;  %v1243_v2 = vsel %vm4429_vm7, %v1241_v55, %v1242_v45  ;;  %v524_v17 = vrot.slane %v522_v59, 4  ;;  %v535_v22 = vshrl.u32 %v4514_v16, 16  ;;  %3510 = vmatmul.mubr.msk.bf16.gmra.mrb[16].mxu1 %vm691_vm3, %v4521_v3  ;;  %v4543_v45 = vld [vmem:[%s5192_s1 + $0xe] sm:$0x3]  ;;  %v1246_v59 = vrot.slane %v4302_v28, 5 }
  0x4a   : > { %v510_v58 = vsel %vm4248_vm4, %v505_v40, %v509_v12  ;;  %v515_v35 = vrot.slane %v514_v4, 4  ;;  %v4535_v30 = vcombine.low %v1240_v50, %v1243_v2  ;;  %v527_v19 = vrot.slane %v525_v46, 5  ;;  %5243 = vst [vmem:[#allocation15_spill] sm:$0xff] %v4543_v45  ;;  %v4557_v46 = vld [vmem:[%s4201_s27 + $0x94] sm:$0xf] }
  0x4b   : > { %3664 = vmatmul.mubr.msk.bf16.vlgmr.msra.gmra.mrb[0].mxu0 %vm691_vm3, %v4500_v63  ;;  %v533_v41 = vrot.slane %v531_v18, 5  ;;  %v537_v37 = vrot.slane %v535_v22, 4  ;;  %v541_v40 = vshll.u32 %v4524_v1, 16  ;;  %v3179_v12 = vrot.slane %v4290_v14, 9  ;;  %v4562_v3 = vld [vmem:[%s4201_s27 + $0x98] sm:$0x1] }
  0x4c   : > { %5242 = vst [vmem:[#allocation14_spill] sm:$0xff] %v4535_v30  ;;  %3696 = vmatpush3.bf16.msra.mxu0 %v4236_v20  ;;  %v520_v50 = vsel %vm4248_vm4, %v515_v35, %v519_v44  ;;  %3667 = vmatprep.mubr.msk.bf16.mxu0 %vm691_vm3, %v4535_v30  ;;  %v528_v55 = vor.u32 %v527_v19, %v524_v17  ;;  %v1249_v4 = vrot.slane %v4309_v32, 5  ;;  %v546_v20 = vshrl.u32 %v4538_v61, 16 }
  0x4d   : > { %v4559_v2 = vcombine.low %v510_v58, %v520_v50  ;;  %v538_v18 = vor.u32 %v537_v37, %v533_v41  ;;  %v543_v22 = vrot.slane %v541_v40, 5  ;;  %4063 = vmatprep.subr.msk.bf16.mxu0 %vm740_vm0, %v4543_v45  ;;  %v1247_v17 = vsel %vm4429_vm7, %v3179_v12, %v1246_v59 }
  0x4e   : > { %v529_v44 = vrot.slane %v528_v55, 4  ;;  %v1248_v35 = vrot.slane %v1246_v59, 4  ;;  %v549_v32 = vshll.u32 %v4538_v61, 16  ;;  %v548_v19 = vrot.slane %v546_v20, 4 }
  0x4f   : > { %5244 = vst [vmem:[#allocation16_spill] sm:$0xff] %v4559_v2  ;;  %3513 = vmatprep.mubr.msk.bf16.mxu1 %vm691_vm3, %v4559_v2  ;;  %v539_v58 = vrot.slane %v538_v18, 4  ;;  %v555_v37 = vshll.u32 %v4557_v46, 16  ;;  %v559_v40 = vshrl.u32 %v4557_v46, 16  ;;  %v565_v59 = vshll.u32 %v4562_v3, 16 }
  0x50   : > { %v534_v50 = vsel %vm4248_vm4, %v529_v44, %v533_v41  ;;  %v1250_v55 = vsel %vm4429_vm7, %v1248_v35, %v1249_v4  ;;  %v551_v12 = vrot.slane %v549_v32, 5  ;;  %v3180_v4 = vrot.slane %v4317_v48, 9 }
  0x51   : > { %v544_v2 = vsel %vm4248_vm4, %v539_v58, %v543_v22  ;;  %v4584_v18 = vcombine.low %v1247_v17, %v1250_v55  ;;  %v557_v20 = vrot.slane %v555_v37, 5  ;;  %v561_v0 = vrot.slane %v559_v40, 4  ;;  %v4600_v58 = vld [vmem:[%s4201_s27 + $0xa4] sm:$0x1] }
  0x52   : > { %v4589_v43 = vcombine.low %v534_v50, %v544_v2  ;;  %v552_v41 = vor.u32 %v551_v12, %v548_v19  ;;  %v567_v44 = vrot.slane %v565_v59, 5  ;;  %v1253_v32 = vrot.slane %v4325_v52, 5 }
  0x53   : > { %5245 = vst [vmem:[#allocation17_spill] sm:$0xff] %v4584_v18  ;;  %3668 = vmatmul.mubr.msk.bf16.gmra.mrb[4].mxu0 %vm691_vm3, %v4584_v18  ;;  %v562_v35 = vor.u32 %v561_v0, %v557_v20  ;;  %v1256_v22 = vrot.slane %v4337_v5, 5  ;;  %v570_v17 = vshrl.u32 %v4580_v60, 16  ;;  %v573_v19 = vshll.u32 %v4580_v60, 16 }
  0x54   : > { %5246 = vst [vmem:[#allocation18_spill] sm:$0xff] %v4589_v43  ;;  %3514 = vmatmul.mubr.msk.bf16.gmra.mrb[20].mxu1 %vm691_vm3, %v4589_v43  ;;  %v553_v2 = vrot.slane %v552_v41, 4  ;;  %v579_v37 = vshll.u32 %v4587_v7, 16  ;;  %v583_v0 = vshrl.u32 %v4587_v7, 16  ;;  %v1254_v5 = vsel %vm4429_vm7, %v3180_v4, %v1253_v32 }
  0x55   : > { %v563_v40 = vrot.slane %v562_v35, 4  ;;  %v1255_v50 = vrot.slane %v1253_v32, 4  ;;  %v572_v55 = vrot.slane %v570_v17, 4  ;;  %v575_v59 = vrot.slane %v573_v19, 5  ;;  %v4619_v32 = vld [vmem:[%s4201_s27 + $0xac] sm:$0xf] }
  0x56   : > { %v558_v12 = vsel %vm4248_vm4, %v553_v2, %v557_v20  ;;  %v581_v41 = vrot.slane %v579_v37, 5  ;;  %v585_v43 = vrot.slane %v583_v0, 4  ;;  %v589_v35 = vshll.u32 %v4600_v58, 16 }
  0x57   : > { %v568_v53 = vsel %vm4248_vm4, %v563_v40, %v567_v44  ;;  %v1257_v18 = vsel %vm4429_vm7, %v1255_v50, %v1256_v22  ;;  %v3181_v4 = vrot.slane %v4342_v13, 9  ;;  %v576_v2 = vor.u32 %v575_v59, %v572_v55 }
  0x58   : > { %v4621_v17 = vcombine.low %v558_v12, %v568_v53  ;;  %v4623_v20 = vcombine.low %v1254_v5, %v1257_v18  ;;  %v586_v19 = vor.u32 %v585_v43, %v581_v41  ;;  %v591_v37 = vrot.slane %v589_v35, 5  ;;  %v4633_v18 = vld [vmem:[%s4201_s27 + $0xb0] sm:$0x1] }
  0x59   : > { %v1260_v0 = vrot.slane %v4349_v24, 5  ;;  %v1263_v44 = vrot.slane %v4366_v8, 5  ;;  %v594_v22 = vshrl.u32 %v4610_v25, 16  ;;  %v577_v53 = vrot.slane %v576_v2, 4 }
  0x5a   : > { %5247 = vst [vmem:[#allocation19_spill] sm:$0xff] %v4621_v17  ;;  %5248 = vst [vmem:[#allocation20_spill] sm:$0xff] %v4623_v20  ;;  %3517 = vmatprep.mubr.msk.bf16.mxu1 %vm691_vm3, %v4621_v17  ;;  %3671 = vmatprep.mubr.msk.bf16.mxu0 %vm691_vm3, %v4623_v20  ;;  %v587_v40 = vrot.slane %v586_v19, 4  ;;  %v597_v43 = vshll.u32 %v4610_v25, 16  ;;  %v603_v5 = vshll.u32 %v4619_v32, 16  ;;  %v607_v12 = vshrl.u32 %v4619_v32, 16 }
  0x5b   : > { %v1261_v8 = vsel %vm4429_vm7, %v3181_v4, %v1260_v0  ;;  %v1262_v50 = vrot.slane %v1260_v0, 4  ;;  %v596_v55 = vrot.slane %v594_v22, 4  ;;  %v582_v59 = vsel %vm4248_vm4, %v577_v53, %v581_v41  ;;  %v4645_v17 = vld [vmem:[%s4201_s27 + $0xb4] sm:$0xf]  ;;  %v4657_v53 = vld [vmem:[%s4201_s27 + $0xb8] sm:$0xf] }
  0x5c   : > { %v592_v35 = vsel %vm4248_vm4, %v587_v40, %v591_v37  ;;  %v599_v2 = vrot.slane %v597_v43, 5  ;;  %v605_v19 = vrot.slane %v603_v5, 5  ;;  %v609_v0 = vrot.slane %v607_v12, 4 }
  0x5d   : > { %v4647_v20 = vcombine.low %v582_v59, %v592_v35  ;;  %v1264_v4 = vsel %vm4429_vm7, %v1262_v50, %v1263_v44  ;;  %v613_v22 = vshll.u32 %v4633_v18, 16  ;;  %v3182_v41 = vrot.slane %v4371_v42, 9  ;;  %v4663_v44 = vld [vmem:[%s4201_s27 + $0xbc] sm:$0x1] }
  0x5e   : > { %v4652_v30 = vcombine.low %v1261_v8, %v1264_v4  ;;  %v600_v63 = vor.u32 %v599_v2, %v596_v55  ;;  %v1267_v37 = vrot.slane %v4376_v6, 5  ;;  %v610_v40 = vor.u32 %v609_v0, %v605_v19 }
  0x5f   : > { %5249 = vst [vmem:[#allocation21_spill] sm:$0xff] %v4647_v20  ;;  %3518 = vmatmul.mubr.msk.bf16.gmra.mrb[24].mxu1 %vm691_vm3, %v4647_v20  ;;  %v615_v43 = vrot.slane %v613_v22, 5  ;;  %v1270_v5 = vrot.slane %v4389_v11, 5  ;;  %v618_v50 = vshrl.u32 %v4645_v17, 16  ;;  %v621_v59 = vshll.u32 %v4645_v17, 16 }
  0x60   : > { %5250 = vst [vmem:[#allocation22_spill] sm:$0xff] %v4652_v30  ;;  %3672 = vmatmul.mubr.msk.bf16.gmra.mrb[8].mxu0 %vm691_vm3, %v4652_v30  ;;  %v601_v8 = vrot.slane %v600_v63, 4  ;;  %v1268_v55 = vsel %vm4429_vm7, %v3182_v41, %v1267_v37  ;;  %v1269_v12 = vrot.slane %v1267_v37, 4  ;;  %v611_v35 = vrot.slane %v610_v40, 4 }
  0x61   : > { %v620_v2 = vrot.slane %v618_v50, 4  ;;  %v627_v4 = vshll.u32 %v4657_v53, 16  ;;  %v631_v11 = vshrl.u32 %v4657_v53, 16  ;;  %v623_v20 = vrot.slane %v621_v59, 5 }
  0x62   : > { %v606_v0 = vsel %vm4248_vm4, %v601_v8, %v605_v19  ;;  %v1271_v22 = vsel %vm4429_vm7, %v1269_v12, %v1270_v5  ;;  %v637_v63 = vshll.u32 %v4663_v44, 16  ;;  %v616_v41 = vsel %vm4248_vm4, %v611_v35, %v615_v43 }
  0x63   : > { %v4680_v37 = vcombine.low %v1268_v55, %v1271_v22  ;;  %v629_v40 = vrot.slane %v627_v4, 5  ;;  %v633_v50 = vrot.slane %v631_v11, 4  ;;  %v4682_v30 = vcombine.low %v606_v0, %v616_v41 }
  0x64   : > { %v624_v21 = vor.u32 %v623_v20, %v620_v2  ;;  %v639_v45 = vrot.slane %v637_v63, 5  ;;  %v3183_v42 = vrot.slane %v4393_v15, 9  ;;  %v1274_v5 = vrot.slane %v4398_v27, 5 }
  0x65   : > { %3675 = vmatprep.mubr.msk.bf16.mxu0 %vm691_vm3, %v4680_v37  ;;  %v634_v19 = vor.u32 %v633_v50, %v629_v40  ;;  %v1277_v8 = vrot.slane %v4412_v47, 5  ;;  %v3184_v43 = vrot.slane %v4420_v54, 9  ;;  %3521 = vmatprep.mubr.msk.bf16.mxu1 %vm691_vm3, %v4682_v30  ;;  %v3143_v20 = vcombine.low %v4215_v9, %v4218_v10 }
  0x66   : > { %v625_v55 = vrot.slane %v624_v21, 4  ;;  %v1281_v12 = vrot.slane %v4436_v36, 5  ;;  %v1284_v59 = vrot.slane %v4449_v51, 5  ;;  %v1275_v2 = vsel %vm4429_vm7, %v3183_v42, %v1274_v5 }
  0x67   : > { %v635_v35 = vrot.slane %v634_v19, 4  ;;  %v1276_v4 = vrot.slane %v1274_v5, 4  ;;  %v1288_v47 = vrot.slane %v4477_v31, 5  ;;  %v3185_v9 = vrot.slane %v4461_v56, 9 }
  0x68   : > { %v630_v11 = vsel %vm4248_vm4, %v625_v55, %v629_v40  ;;  %v1282_v21 = vsel %vm4429_vm7, %v3184_v43, %v1281_v12  ;;  %v1283_v0 = vrot.slane %v1281_v12, 4  ;;  %v1291_v42 = vrot.slane %v4482_v49, 5 }
  0x69   : > { %v640_v10 = vsel %vm4248_vm4, %v635_v35, %v639_v45  ;;  %v1278_v51 = vsel %vm4429_vm7, %v1276_v4, %v1277_v8  ;;  %v1290_v22 = vrot.slane %v1288_v47, 4  ;;  %v3186_v19 = vrot.slane %v4508_v29, 9 }
  0x6a   : > { %v4709_v63 = vcombine.low %v630_v11, %v640_v10  ;;  %v4711_v41 = vcombine.low %v1275_v2, %v1278_v51  ;;  %v1285_v40 = vsel %vm4429_vm7, %v1283_v0, %v1284_v59  ;;  %v1295_v5 = vrot.slane %v4514_v16, 5 }
  0x6b   : > { %v4715_v50 = vcombine.low %v1282_v21, %v1285_v40  ;;  %v1298_v49 = vrot.slane %v4524_v1, 5  ;;  %v1289_v45 = vsel %vm4429_vm7, %v3185_v9, %v1288_v47  ;;  %v1292_v8 = vsel %vm4429_vm7, %v1290_v22, %v1291_v42 }
  0x6c   : > { %3522 = vmatmul.mubr.msk.bf16.gmra.mrb[28].mxu1 %vm691_vm3, %v4709_v63  ;;  %3676 = vmatmul.mubr.msk.bf16.gmra.mrb[12].mxu0 %vm691_vm3, %v4711_v41  ;;  %v1297_v43 = vrot.slane %v1295_v5, 4  ;;  %v1302_v55 = vrot.slane %v4557_v46, 5  ;;  %v1309_v12 = vrot.slane %v4587_v7, 5  ;;  %v1296_v59 = vsel %vm4429_vm7, %v3186_v19, %v1295_v5 }
  0x6d   : > { %3527 = vmatprep.mubr.msk.bf16.mxu1 %vm691_vm3, %v3143_v20  ;;  %3679 = vmatprep.mubr.msk.bf16.mxu0 %vm691_vm3, %v4715_v50  ;;  %v4737_v20 = vcombine.low %v1289_v45, %v1292_v8  ;;  %v3187_v35 = vrot.slane %v4538_v61, 9  ;;  %v1305_v4 = vrot.slane %v4562_v3, 5  ;;  %v4743_v47 = vcombine.low %v4244_v33, %v4257_v39  ;;  %v4755_v3 = vld [vmem:[%s5192_s1 + $0x6] sm:$0x3] }
  0x6e   : > { %v1299_v1 = vsel %vm4429_vm7, %v1297_v43, %v1298_v49  ;;  %v1304_v2 = vrot.slane %v1302_v55, 4  ;;  %v3188_v11 = vrot.slane %v4580_v60, 9  ;;  %v1427_v21 = vsel %vm740_vm0, %v4297_v23, 0 }
  0x6f   : > { %v4748_v0 = vcombine.low %v1296_v59, %v1299_v1  ;;  %v1311_v9 = vrot.slane %v1309_v12, 4  ;;  %v1312_v10 = vrot.slane %v4600_v58, 5  ;;  %v1316_v51 = vrot.slane %v4619_v32, 5 }
  0x70   : > { %v1303_v33 = vsel %vm4429_vm7, %v3187_v35, %v1302_v55  ;;  %v1306_v39 = vsel %vm4429_vm7, %v1304_v2, %v1305_v4  ;;  %v4769_v23 = vcombine.low %v4271_v57, %v4276_v62  ;;  %v1310_v58 = vsel %vm4429_vm7, %v3188_v11, %v1309_v12 }
  0x71   : > { %v4775_v22 = vcombine.low %v4393_v15, %v4398_v27  ;;  %v1313_v42 = vsel %vm4429_vm7, %v1311_v9, %v1312_v10  ;;  %v3189_v40 = vrot.slane %v4610_v25, 9  ;;  %v1323_v19 = vrot.slane %v4657_v53, 5 }
  0x72   : > { %v4785_v57 = vcombine.low %v4420_v54, %v4436_v36  ;;  %v4789_v62 = vcombine.low %v1303_v33, %v1306_v39  ;;  %v1318_v15 = vrot.slane %v1316_v51, 4  ;;  %v1319_v27 = vrot.slane %v4633_v18, 5  ;;  %v249_v18 = vld [vmem:[%s4201_s27 + $0xc8] sm:$0x1] }
  0x73   : > { %v4794_v5 = vcombine.low %v4461_v56, %v4477_v31  ;;  %v4798_v49 = vcombine.low %v4508_v29, %v4514_v16  ;;  %v4802_v54 = vcombine.low %v4538_v61, %v4557_v46  ;;  %v4806_v36 = vcombine.low %v4580_v60, %v4587_v7  ;;  %v4825_v61 = vld [vmem:[%s4201_s27 + $0xc4] sm:$0xf] }
  0x74   : > { %3528 = vmatmul.mubr.msk.bf16.vlgmr.msra.gmra.mrb[0].mxu1 %vm691_vm3, %v4254_v38  ;;  %3680 = vmatmul.mubr.msk.bf16.gmra.mrb[16].mxu0 %vm691_vm3, %v4737_v20  ;;  %v4810_v45 = vcombine.low %v4610_v25, %v4619_v32  ;;  %v4814_v56 = vcombine.low %v4290_v14, %v4302_v28  ;;  %v4816_v31 = vcombine.low %v1310_v58, %v1313_v42  ;;  %v3190_v16 = vrot.slane %v4645_v17, 9  ;;  %v5251_v42 = vld [vmem:[#allocation5_spill] sm:$0xff] }
  0x75   : > { %3560 = vmatpush3.bf16.msra.mxu1 %v1427_v21  ;;  %3531 = vmatprep.mubr.msk.bf16.mxu1 %vm691_vm3, %v4743_v47  ;;  %v4820_v29 = vcombine.low %v4645_v17, %v4657_v53  ;;  %v1325_v7 = vrot.slane %v1323_v19, 4  ;;  %v1326_v60 = vrot.slane %v4663_v44, 5  ;;  %v1317_v14 = vsel %vm4429_vm7, %v3189_v40, %v1316_v51  ;;  %v4845_v17 = vld [vmem:[%s4201_s27 + $0xc0] sm:$0xf] }
  0x76   : > { %3683 = vmatprep.mubr.msk.bf16.mxu0 %vm691_vm3, %v4748_v0  ;;  %4058 = vmatprep.subr.msk.bf16.mxu1 %vm740_vm0, %v4755_v3  ;;  %v1320_v28 = vsel %vm4429_vm7, %v1318_v15, %v1319_v27  ;;  %v2059_v25 = vrot.slane %v4825_v61, 5  ;;  %v1324_v46 = vsel %vm4429_vm7, %v3190_v16, %v1323_v19  ;;  %v4850_v53 = vcombine.low %v4317_v48, %v4325_v52 }
  0x77   : > { %v1327_v32 = vsel %vm4429_vm7, %v1325_v7, %v1326_v60  ;;  %v4852_v44 = vcombine.low %v1317_v14, %v1320_v28  ;;  %v4856_v8 = vcombine.low %v4342_v13, %v4349_v24  ;;  %v1829_v43 = vshrl.u32 %v4845_v17, 16  ;;  %v3316_v60 = vld [vmem:[%s5192_s1 + $0x10] sm:$0x3]  ;;  %v4108_v14 = vld [vmem:[%s4201_s27 + $0x4] sm:$0xf] }
  0x78   : > { %v1832_v55 = vshll.u32 %v4845_v17, 16  ;;  %v1838_v12 = vshll.u32 %v4825_v61, 16  ;;  %v1842_v59 = vshrl.u32 %v4825_v61, 16  ;;  %v4862_v1 = vcombine.low %v1324_v46, %v1327_v32  ;;  %v4110_v32 = vld [vmem:[%s4201_s27] sm:$0xf] }
  0x79   : > { %v3260_v35 = vrot.slane %v4845_v17, 9  ;;  %v2061_v48 = vrot.slane %v2059_v25, 4  ;;  %v2062_v52 = vrot.slane %v249_v18, 5  ;;  %v1831_v2 = vrot.slane %v1829_v43, 4 }
  0x7a   : > { %v1834_v4 = vrot.slane %v1832_v55, 5  ;;  %v1840_v11 = vrot.slane %v1838_v12, 5  ;;  %v1844_v21 = vrot.slane %v1842_v59, 4  ;;  %v1848_v9 = vshll.u32 %v249_v18, 16 }
  0x7b   : > { %v2060_v10 = vsel %vm4429_vm7, %v3260_v35, %v2059_v25  ;;  %v2063_v51 = vsel %vm4429_vm7, %v2061_v48, %v2062_v52  ;;  %v4879_v40 = vcombine.low %v5251_v42, %v4376_v6  ;;  %v5252_v6 = vld [vmem:[#allocation15_spill] sm:$0xff]  ;;  %v1218_v28 = vrot.slane %v4108_v14, 5  ;;  %v5253_v48 = vld [vmem:[#allocation10_spill] sm:$0xff]  ;;  %v5254_v52 = vld [vmem:[#allocation12_spill] sm:$0xff] }
  0x7c   : > { %3532 = vmatmul.mubr.msk.bf16.gmra.mrb[4].mxu1 %vm691_vm3, %v4769_v23  ;;  %3684 = vmatmul.mubr.msk.bf16.gmra.mrb[20].mxu0 %vm691_vm3, %v4789_v62  ;;  %v1835_v13 = vor.u32 %v1834_v4, %v1831_v2  ;;  %v1845_v24 = vor.u32 %v1844_v21, %v1840_v11  ;;  %v1850_v58 = vrot.slane %v1848_v9, 5  ;;  %v4881_v19 = vcombine.low %v2060_v10, %v2063_v51  ;;  %v4109_v25 = vld [vmem:[%s4201_s27 + $0x8] sm:$0x1]  ;;  %v5256_v4 = vld [vmem:[#allocation17_spill] sm:$0xff]  ;;  %v5257_v21 = vld [vmem:[#allocation20_spill] sm:$0xff] }
  0x7d   : > { %3535 = vmatprep.mubr.msk.bf16.mxu1 %vm691_vm3, %v4814_v56  ;;  %3687 = vmatprep.mubr.msk.bf16.mxu0 %vm691_vm3, %v4816_v31  ;;  %v2507_v7 = vsel %vm740_vm0, %v5252_v6, 0  ;;  %v1221_v46 = vrot.slane %v4109_v25, 5  ;;  %v3175_v18 = vrot.slane %v4110_v32, 9  ;;  %v1220_v43 = vrot.slane %v1218_v28, 4  ;;  %v4111_v2 = vld [vmem:[%s5192_s1 + $0x8] sm:$0x3] }
  0x7e   : > { %v1836_v33 = vrot.slane %v1835_v13, 4  ;;  %v1846_v39 = vrot.slane %v1845_v24, 4  ;;  %v1633_v35 = vsel %vm740_vm0, %v4755_v3, 0  ;;  %v5255_v3 = vld [vmem:[#allocation14_spill] sm:$0xff]  ;;  %v4976_v24 = vld [vmem:[%s4201_s27 + $0xcc] sm:$0xf] }
  0x7f   : > { %v1219_v55 = vsel %vm4429_vm7, %v3175_v18, %v1218_v28  ;;  %v1222_v12 = vsel %vm4429_vm7, %v1220_v43, %v1221_v46  ;;  %v5258_v13 = vld [vmem:[#allocation22_spill] sm:$0xff]  ;;  %v4979_v9 = vld [vmem:[%s4201_s27 + $0xd0] sm:$0xf]  ;;  %v2719_v10 = vsel %vm740_vm0, %v3316_v60, 0  ;;  %v5264_v42 = vld [vmem:[#allocation9_spill] sm:$0xff]  ;;  %v2478_v14 = vshll.u32 %v4976_v24, 16 }
  0x80   : > { %v1841_v15 = vsel %vm4248_vm4, %v1836_v33, %v1840_v11  ;;  %v1851_v27 = vsel %vm4248_vm4, %v1846_v39, %v1850_v58  ;;  %v3192_v59 = vcombine.low %v1219_v55, %v1222_v12  ;;  %v4965_v11 = vcombine.low %v4845_v17, %v4825_v61  ;;  %v5259_v17 = vld [vmem:[#allocation3_spill] sm:$0xff]  ;;  %v5260_v51 = vld [vmem:[#allocation4_spill] sm:$0xff]  ;;  %v5261_v33 = vld [vmem:[#allocation6_spill] sm:$0xff] }
  0x81   : > { %v4887_v16 = vcombine.low %v1841_v15, %v1851_v27  ;;  %v3280_v61 = vcombine.low %v4976_v24, %v4979_v9  ;;  %v5262_v39 = vld [vmem:[#allocation7_spill] sm:$0xff]  ;;  %v5263_v58 = vld [vmem:[#allocation8_spill] sm:$0xff]  ;;  %v5266_v27 = vld [vmem:[#allocation13_spill] sm:$0xff]  ;;  %v2488_v28 = vshrl.u32 %v4979_v9, 16  ;;  %v2480_v32 = vrot.slane %v2478_v14, 5 }
  0x82   : > { %v5265_v15 = vld [vmem:[#allocation11_spill] sm:$0xff]  ;;  %v5267_v6 = vld [vmem:[#allocation16_spill] sm:$0xff]  ;;  %v5269_v25 = vld [vmem:[#allocation2_spill] sm:$0xff]  ;;  %v2705_v34 = vrot.slane %v4979_v9, 5 }
  0x83   : > { %v5270_v46 = vld [vmem:[#allocation19_spill] sm:$0xff]  ;;  %v2490_v43 = vrot.slane %v2488_v28, 4  ;;  %v252_v55 = vld [vmem:[%s4201_s27 + $0xd4] sm:$0x1]  ;;  %v5271_v12 = vld [vmem:[#allocation21_spill] sm:$0xff] }
  0x84   : > { %3536 = vmatmul.mubr.msk.bf16.gmra.mrb[8].mxu1 %vm691_vm3, %v4850_v53  ;;  %3688 = vmatmul.mubr.msk.bf16.gmra.mrb[24].mxu0 %vm691_vm3, %v4852_v44 }
  0x85   : > { %3539 = vmatprep.mubr.msk.bf16.mxu1 %vm691_vm3, %v4856_v8  ;;  %3691 = vmatprep.mubr.msk.bf16.mxu0 %vm691_vm3, %v4862_v1 }
  0x8c   : > { %3540 = vmatmul.mubr.msk.bf16.gmra.mrb[12].mxu1 %vm691_vm3, %v4879_v40  ;;  %3692 = vmatmul.mubr.msk.bf16.gmra.mrb[28].mxu0 %vm691_vm3, %v4881_v19 }
  0x8d   : > { %3543 = vmatprep.mubr.msk.bf16.mxu1 %vm691_vm3, %v4775_v22  ;;  %3697 = vmatprep.mubr.msk.bf16.mxu0 %vm691_vm3, %v4743_v47 }
  0x94   : > { %3544 = vmatmul.mubr.msk.bf16.gmra.mrb[16].mxu1 %vm691_vm3, %v4785_v57  ;;  %3698 = vmatmul.mubr.msk.bf16.vlgmr.msra.gmra.mrb[0].mxu0 %vm691_vm3, %v4769_v23 }
  0x95   : > { %3730 = vmatpush3.bf16.msra.mxu0 %v2507_v7  ;;  %3547 = vmatprep.mubr.msk.bf16.mxu1 %vm691_vm3, %v4794_v5  ;;  %v5268_v7 = vld [vmem:[#allocation18_spill] sm:$0xff] }
  0x96   : > { %3701 = vmatprep.mubr.msk.bf16.mxu0 %vm691_vm3, %v4814_v56  ;;  %4064 = vmatprep.subr.msk.bf16.mxu0 %vm740_vm0, %v3316_v60  ;;  %v2475_v60 = vshrl.u32 %v4976_v24, 16 }
  0x9c   : > { %3548 = vmatmul.mubr.msk.bf16.gmra.mrb[20].mxu1 %vm691_vm3, %v4798_v49  ;;  %3702 = vmatmul.mubr.msk.bf16.gmra.mrb[4].mxu0 %vm691_vm3, %v4850_v53 }
  0x9d   : > { %3551 = vmatprep.mubr.msk.bf16.mxu1 %vm691_vm3, %v4802_v54  ;;  %3705 = vmatprep.mubr.msk.bf16.mxu0 %vm691_vm3, %v4856_v8 }
  0xa4   : > { %3552 = vmatmul.mubr.msk.bf16.gmra.mrb[24].mxu1 %vm691_vm3, %v4806_v36  ;;  %3706 = vmatmul.mubr.msk.bf16.gmra.mrb[8].mxu0 %vm691_vm3, %v4879_v40 }
  0xa5   : > { %3555 = vmatprep.mubr.msk.bf16.mxu1 %vm691_vm3, %v4810_v45  ;;  %3709 = vmatprep.mubr.msk.bf16.mxu0 %vm691_vm3, %v4775_v22 }
  0xac   : > { %3556 = vmatmul.mubr.msk.bf16.gmra.mrb[28].mxu1 %vm691_vm3, %v4820_v29  ;;  %3710 = vmatmul.mubr.msk.bf16.gmra.mrb[12].mxu0 %vm691_vm3, %v4785_v57 }
  0xad   : > { %3561 = vmatprep.mubr.msk.bf16.mxu1 %vm691_vm3, %v3192_v59  ;;  %3713 = vmatprep.mubr.msk.bf16.mxu0 %vm691_vm3, %v4794_v5 }
  0xb4   : > { %3562 = vmatmul.mubr.msk.bf16.vlgmr.msra.gmra.mrb[0].mxu1 %vm691_vm3, %v5253_v48  ;;  %3714 = vmatmul.mubr.msk.bf16.gmra.mrb[16].mxu0 %vm691_vm3, %v4798_v49 }
  0xb5   : > { %3594 = vmatpush3.bf16.msra.mxu1 %v1633_v35  ;;  %3565 = vmatprep.mubr.msk.bf16.mxu1 %vm691_vm3, %v5254_v52  ;;  %v2494_v35 = vshll.u32 %v252_v55, 16 }
  0xb6   : > { %3717 = vmatprep.mubr.msk.bf16.mxu0 %vm691_vm3, %v4802_v54  ;;  %4060 = vmatprep.subr.msk.bf16.mxu1 %vm740_vm0, %v4111_v2 }
  0xbc   : > { %3566 = vmatmul.mubr.msk.bf16.gmra.mrb[4].mxu1 %vm691_vm3, %v5255_v3  ;;  %3718 = vmatmul.mubr.msk.bf16.gmra.mrb[20].mxu0 %vm691_vm3, %v4806_v36 }
  0xbd   : > { %3569 = vmatprep.mubr.msk.bf16.mxu1 %vm691_vm3, %v5256_v4  ;;  %3721 = vmatprep.mubr.msk.bf16.mxu0 %vm691_vm3, %v4810_v45 }
  0xc4   : > { %3570 = vmatmul.mubr.msk.bf16.gmra.mrb[8].mxu1 %vm691_vm3, %v5257_v21  ;;  %3722 = vmatmul.mubr.msk.bf16.gmra.mrb[24].mxu0 %vm691_vm3, %v4820_v29 }
  0xc5   : > { %3573 = vmatprep.mubr.msk.bf16.mxu1 %vm691_vm3, %v5258_v13  ;;  %3725 = vmatprep.mubr.msk.bf16.mxu0 %vm691_vm3, %v4965_v11 }
  0xcc   : > { %3574 = vmatmul.mubr.msk.bf16.gmra.mrb[12].mxu1 %vm691_vm3, %v4680_v37  ;;  %3726 = vmatmul.mubr.msk.bf16.gmra.mrb[28].mxu0 %vm691_vm3, %v3280_v61  ;;  %v2496_v61 = vrot.slane %v2494_v35, 5 }
  0xcd   : > { %3577 = vmatprep.mubr.msk.bf16.mxu1 %vm691_vm3, %v4711_v41  ;;  %3731 = vmatprep.mubr.msk.bf16.mxu0 %vm691_vm3, %v5259_v17 }
  0xd4   : > { %3578 = vmatmul.mubr.msk.bf16.gmra.mrb[16].mxu1 %vm691_vm3, %v4715_v50  ;;  %3732 = vmatmul.mubr.msk.bf16.vlgmr.msra.gmra.mrb[0].mxu0 %vm691_vm3, %v5260_v51 }
  0xd5   : > { %3764 = vmatpush3.bf16.msra.mxu0 %v2719_v10  ;;  %3581 = vmatprep.mubr.msk.bf16.mxu1 %vm691_vm3, %v4737_v20 }
  0xd6   : > { %3735 = vmatprep.mubr.msk.bf16.mxu0 %vm691_vm3, %v5261_v33 }
  0xdc   : > { %3582 = vmatmul.mubr.msk.bf16.gmra.mrb[20].mxu1 %vm691_vm3, %v4748_v0  ;;  %3736 = vmatmul.mubr.msk.bf16.gmra.mrb[4].mxu0 %vm691_vm3, %v5262_v39 }
  0xdd   : > { %3585 = vmatprep.mubr.msk.bf16.mxu1 %vm691_vm3, %v4789_v62  ;;  %3739 = vmatprep.mubr.msk.bf16.mxu0 %vm691_vm3, %v5263_v58 }
  0xe4   : > { %3586 = vmatmul.mubr.msk.bf16.gmra.mrb[24].mxu1 %vm691_vm3, %v4816_v31  ;;  %3740 = vmatmul.mubr.msk.bf16.gmra.mrb[8].mxu0 %vm691_vm3, %v5264_v42 }
  0xe5   : > { %3589 = vmatprep.mubr.msk.bf16.mxu1 %vm691_vm3, %v4852_v44  ;;  %3743 = vmatprep.mubr.msk.bf16.mxu0 %vm691_vm3, %v5265_v15 }
  0xec   : > { %3590 = vmatmul.mubr.msk.bf16.gmra.mrb[28].mxu1 %vm691_vm3, %v4862_v1  ;;  %3744 = vmatmul.mubr.msk.bf16.gmra.mrb[12].mxu0 %vm691_vm3, %v5266_v27 }
  0xed   : > { %3595 = vmatprep.mubr.msk.bf16.mxu1 %vm691_vm3, %v4254_v38  ;;  %3747 = vmatprep.mubr.msk.bf16.mxu0 %vm691_vm3, %v5267_v6  ;;  %v2484_v38 = vshll.u32 %v4979_v9, 16 }
  0xef   : > { %v2486_v18 = vrot.slane %v2484_v38, 5 }
  0xf1   : > { %v2491_v59 = vor.u32 %v2490_v43, %v2486_v18 }
  0xf3   : > { %v2492_v2 = vrot.slane %v2491_v59, 4 }
  0xf4   : > { %3596 = vmatmul.mubr.msk.bf16.vlgmr.msra.gmra.mrb[0].mxu1 %vm691_vm3, %v4743_v47  ;;  %3748 = vmatmul.mubr.msk.bf16.gmra.mrb[16].mxu0 %vm691_vm3, %v5268_v7  ;;  %v2477_v47 = vrot.slane %v2475_v60, 4 }
  0xf5   : > { %3798 = vmatpush3.bf16.msra.mxu1 %v5269_v25  ;;  %3599 = vmatprep.mubr.msk.bf16.mxu1 %vm691_vm3, %v4769_v23 }
  0xf6   : > { %3751 = vmatprep.mubr.msk.bf16.mxu0 %vm691_vm3, %v5270_v46  ;;  %v2481_v23 = vor.u32 %v2480_v32, %v2477_v47 }
  0xf8   : > { %v2482_v48 = vrot.slane %v2481_v23, 4 }
  0xfc   : > { %3600 = vmatmul.mubr.msk.bf16.gmra.mrb[4].mxu1 %vm691_vm3, %v4814_v56  ;;  %3752 = vmatmul.mubr.msk.bf16.gmra.mrb[20].mxu0 %vm691_vm3, %v5271_v12  ;;  %v2487_v56 = vsel %vm4248_vm4, %v2482_v48, %v2486_v18 }
  0xfd   : > { %3603 = vmatprep.mubr.msk.bf16.mxu1 %vm691_vm3, %v4850_v53  ;;  %3755 = vmatprep.mubr.msk.bf16.mxu0 %vm691_vm3, %v4682_v30  ;;  %v2497_v53 = vsel %vm4248_vm4, %v2492_v2, %v2496_v61 }
  0xfe   : > { %v3298_v17 = vcombine.low %v2487_v56, %v2497_v53 }
 0x104   : > { %3604 = vmatmul.mubr.msk.bf16.gmra.mrb[8].mxu1 %vm691_vm3, %v4856_v8  ;;  %3756 = vmatmul.mubr.msk.bf16.gmra.mrb[24].mxu0 %vm691_vm3, %v4709_v63 }
 0x105   : > { %3607 = vmatprep.mubr.msk.bf16.mxu1 %vm691_vm3, %v4879_v40  ;;  %3759 = vmatprep.mubr.msk.bf16.mxu0 %vm691_vm3, %v4887_v16 }
 0x10c   : > { %3608 = vmatmul.mubr.msk.bf16.gmra.mrb[12].mxu1 %vm691_vm3, %v4775_v22  ;;  %3760 = vmatmul.mubr.msk.bf16.gmra.mrb[28].mxu0 %vm691_vm3, %v3298_v17 }
 0x10d   : > { %3611 = vmatprep.mubr.msk.bf16.mxu1 %vm691_vm3, %v4785_v57  ;;  %3765 = vmatprep.mubr.msk.bf16.mxu0 %vm691_vm3, %v5254_v52 }
 0x114   : > { %3612 = vmatmul.mubr.msk.bf16.gmra.mrb[16].mxu1 %vm691_vm3, %v4794_v5  ;;  %3766 = vmatmul.mubr.msk.bf16.vlgmr.msra.gmra.mrb[0].mxu0 %vm691_vm3, %v5255_v3  ;;  %v5132_v3 = vld [vmem:[%s5193_s2] ss:$0 sm:$0xff] }
 0x115   : > { %3615 = vmatprep.mubr.msk.bf16.mxu1 %vm691_vm3, %v4798_v49  ;;  %3769 = vmatprep.mubr.msk.bf16.mxu0 %vm691_vm3, %v5256_v4 }
 0x11c   : > { %3616 = vmatmul.mubr.msk.bf16.gmra.mrb[20].mxu1 %vm691_vm3, %v4802_v54  ;;  %3770 = vmatmul.mubr.msk.bf16.gmra.mrb[4].mxu0 %vm691_vm3, %v5257_v21 }
 0x11d   : > { %3619 = vmatprep.mubr.msk.bf16.mxu1 %vm691_vm3, %v4806_v36  ;;  %3773 = vmatprep.mubr.msk.bf16.mxu0 %vm691_vm3, %v5258_v13 }
 0x124   : > { %3620 = vmatmul.mubr.msk.bf16.gmra.mrb[24].mxu1 %vm691_vm3, %v4810_v45  ;;  %3774 = vmatmul.mubr.msk.bf16.gmra.mrb[8].mxu0 %vm691_vm3, %v4680_v37  ;;  %v3315_v37 = vrot.slane %v4976_v24, 9 }
 0x125   : > { %3623 = vmatprep.mubr.msk.bf16.mxu1 %vm691_vm3, %v4820_v29  ;;  %3777 = vmatprep.mubr.msk.bf16.mxu0 %vm691_vm3, %v4711_v41  ;;  %v2707_v41 = vrot.slane %v2705_v34, 4 }
 0x12c   : > { %3624 = vmatmul.mubr.msk.bf16.gmra.mrb[28].mxu1 %vm691_vm3, %v4965_v11  ;;  %3778 = vmatmul.mubr.msk.bf16.gmra.mrb[12].mxu0 %vm691_vm3, %v4715_v50  ;;  %v2708_v50 = vrot.slane %v252_v55, 5 }
 0x12d   : > { %3645 = vmatprep.mubr.msk.bf16.mxu1 %vm691_vm3, %v5266_v27  ;;  %3781 = vmatprep.mubr.msk.bf16.mxu0 %vm691_vm3, %v4737_v20  ;;  %v2706_v20 = vsel %vm4429_vm7, %v3315_v37, %v2705_v34 }
 0x134   : > { %3646 = vmatmul.mubr.msk.bf16.vlgmr.msra.gmra.mrb[16].mxu1 %vm691_vm3, %v5267_v6  ;;  %3782 = vmatmul.mubr.msk.bf16.gmra.mrb[16].mxu0 %vm691_vm3, %v4748_v0  ;;  %v2709_v0 = vsel %vm4429_vm7, %v2707_v41, %v2708_v50 }
 0x135   : > { %3649 = vmatprep.mubr.msk.bf16.mxu1 %vm691_vm3, %v5268_v7  ;;  %3785 = vmatprep.mubr.msk.bf16.mxu0 %vm691_vm3, %v4789_v62  ;;  %v3317_v22 = vcombine.low %v2706_v20, %v2709_v0 }
 0x13c   : > { %3650 = vmatmul.mubr.msk.bf16.gmra.mrb[20].mxu1 %vm691_vm3, %v5270_v46  ;;  %3786 = vmatmul.mubr.msk.bf16.gmra.mrb[20].mxu0 %vm691_vm3, %v4816_v31 }
 0x13d   : > { %3653 = vmatprep.mubr.msk.bf16.mxu1 %vm691_vm3, %v5271_v12  ;;  %3789 = vmatprep.mubr.msk.bf16.mxu0 %vm691_vm3, %v4852_v44 }
 0x144   : > { %3654 = vmatmul.mubr.msk.bf16.gmra.mrb[24].mxu1 %vm691_vm3, %v4682_v30  ;;  %3790 = vmatmul.mubr.msk.bf16.gmra.mrb[24].mxu0 %vm691_vm3, %v4862_v1 }
 0x145   : > { %3657 = vmatprep.mubr.msk.bf16.mxu1 %vm691_vm3, %v4709_v63  ;;  %3793 = vmatprep.mubr.msk.bf16.mxu0 %vm691_vm3, %v4881_v19 }
 0x14c   : > { %3658 = vmatmul.mubr.msk.bf16.gmra.mrb[28].mxu1 %vm691_vm3, %v4887_v16  ;;  %3794 = vmatmul.mubr.msk.bf16.gmra.mrb[28].mxu0 %vm691_vm3, %v3317_v22 }
 0x1c7   : > { %v3597_v30 = vpop.f32.mrb[0].mxu1 }
 0x1c8   : > { %v1669_v57 = vpop.f32.mrb[1].mxu1 }
 0x1c9   : > { %v3598_v62 = vpop.f32.mrb[2].mxu1 }
 0x1ca   : > { %v1672_v5 = vpop.f32.mrb[3].mxu1 }
 0x1cf   : > { %v3601_v63 = vpop.f32.mrb[4].mxu1 }
 0x1d0   : > { %v1685_v49 = vpop.f32.mrb[5].mxu1 }
 0x1d1   : > { %v3602_v54 = vpop.f32.mrb[6].mxu1 }
 0x1d2   : > { %v1688_v36 = vpop.f32.mrb[7].mxu1 }
 0x1d7   : > { %v3605_v45 = vpop.f32.mrb[8].mxu1 }
 0x1d8   : > { %v1701_v31 = vpop.f32.mrb[9].mxu1 }
 0x1d9   : > { %v3606_v29 = vpop.f32.mrb[10].mxu1 }
 0x1da   : > { %v1704_v44 = vpop.f32.mrb[11].mxu1 }
 0x1df   : > { %v3609_v26 = vpop.f32.mrb[12].mxu1 }
 0x1e0   : > { %v1717_v8 = vpop.f32.mrb[13].mxu1 }
 0x1e1   : > { %v3610_v1 = vpop.f32.mrb[14].mxu1 }
 0x1e2   : > { %v1720_v40 = vpop.f32.mrb[15].mxu1 }
 0x1e7   : > { %v3767_v19 = vpop.f32.mrb[0].mxu0 }
 0x1e8   : > { %v3799_v16 = vadd.f32 %v3767_v19, %v3597_v30  ;;  %v2755_v52 = vpop.f32.mrb[1].mxu0 }
 0x1e9   : > { %v3800_v4 = vadd.f32 %v2755_v52, %v1669_v57  ;;  %v3768_v11 = vpop.f32.mrb[2].mxu0 }
 0x1ea   : > { %v3801_v21 = vadd.f32 %v3768_v11, %v3598_v62  ;;  %v2758_v13 = vpop.f32.mrb[3].mxu0  ;;  %v2923_v7 = vadd.f32 %v3799_v16, %v5132_v3 }
 0x1eb   : > { %v3802_v24 = vadd.f32 %v2758_v13, %v1672_v5  ;;  %v2921_v9 = vadd.f32 %v3800_v4, %v5132_v3 }
 0x1ec   : > { %v2924_v14 = vadd.f32 %v3801_v21, %v5132_v3 }
 0x1ed   : > { %2953 = vxpose.xlu0.b32.start [1/16] (narrow) %v2921_v9, 8  ;;  %v2922_v51 = vadd.f32 %v3802_v24, %v5132_v3 }
 0x1ef   : > { %v3771_v10 = vpop.f32.mrb[4].mxu0 }
 0x1f0   : > { %v3803_v33 = vadd.f32 %v3771_v10, %v3601_v63  ;;  %v2771_v39 = vpop.f32.mrb[5].mxu0 }
 0x1f1   : > { %v3804_v58 = vadd.f32 %v2771_v39, %v1685_v49  ;;  %v3772_v42 = vpop.f32.mrb[6].mxu0  ;;  %2954 = vxpose.xlu0.b32.cont [2/16] (narrow) %v2922_v51, 8 }
 0x1f2   : > { %v3805_v15 = vadd.f32 %v3772_v42, %v3602_v54  ;;  %v2774_v27 = vpop.f32.mrb[7].mxu0  ;;  %v2927_v53 = vadd.f32 %v3803_v33, %v5132_v3 }
 0x1f3   : > { %v3806_v6 = vadd.f32 %v2774_v27, %v1688_v36  ;;  %v2925_v43 = vadd.f32 %v3804_v58, %v5132_v3 }
 0x1f4   : > { %v2928_v37 = vadd.f32 %v3805_v15, %v5132_v3 }
 0x1f5   : > { %2955 = vxpose.xlu0.b32.cont [3/16] (narrow) %v2923_v7, 8  ;;  %v2926_v12 = vadd.f32 %v3806_v6, %v5132_v3 }
 0x1f7   : > { %v3775_v60 = vpop.f32.mrb[8].mxu0 }
 0x1f8   : > { %v3807_v28 = vadd.f32 %v3775_v60, %v3605_v45  ;;  %v2787_v25 = vpop.f32.mrb[9].mxu0 }
 0x1f9   : > { %v3808_v38 = vadd.f32 %v2787_v25, %v1701_v31  ;;  %v3776_v46 = vpop.f32.mrb[10].mxu0  ;;  %2956 = vxpose.xlu0.b32.cont [4/16] (narrow) %v2924_v14, 8 }
 0x1fa   : > { %v3809_v47 = vadd.f32 %v3776_v46, %v3606_v29  ;;  %v2790_v32 = vpop.f32.mrb[11].mxu0  ;;  %v2931_v21 = vadd.f32 %v3807_v28, %v5132_v3 }
 0x1fb   : > { %v3810_v18 = vadd.f32 %v2790_v32, %v1704_v44  ;;  %v2929_v49 = vadd.f32 %v3808_v38, %v5132_v3 }
 0x1fc   : > { %v2932_v10 = vadd.f32 %v3809_v47, %v5132_v3 }
 0x1fd   : > { %2957 = vxpose.xlu0.b32.cont [5/16] (narrow) %v2925_v43, 8  ;;  %v2930_v31 = vadd.f32 %v3810_v18, %v5132_v3 }
 0x1ff   : > { %v3779_v55 = vpop.f32.mrb[12].mxu0 }
 0x200   : > { %v5140_v23 = vadd.f32 %v3779_v55, %v3609_v26  ;;  %v2803_v59 = vpop.f32.mrb[13].mxu0 }
 0x201   : > { %v5142_v35 = vadd.f32 %v2803_v59, %v1717_v8  ;;  %v3780_v48 = vpop.f32.mrb[14].mxu0  ;;  %2958 = vxpose.xlu0.b32.cont [6/16] (narrow) %v2926_v12, 8 }
 0x202   : > { %v5144_v2 = vadd.f32 %v3780_v48, %v3610_v1  ;;  %v2806_v61 = vpop.f32.mrb[15].mxu0 }
 0x203   : > { %v5146_v56 = vadd.f32 %v2806_v61, %v1720_v40  ;;  %v2933_v25 = vadd.f32 %v5142_v35, %v5132_v3 }
 0x205   : > { %2959 = vxpose.xlu0.b32.cont [7/16] (narrow) %v2927_v53, 8  ;;  %v2934_v55 = vadd.f32 %v5146_v56, %v5132_v3 }
 0x207   : > { %v3647_v17 = vpop.f32.mrb[16].mxu1  ;;  %v3783_v34 = vpop.f32.mrb[16].mxu0 }
 0x208   : > { %v3815_v41 = vadd.f32 %v3783_v34, %v3647_v17  ;;  %v1961_v50 = vpop.f32.mrb[17].mxu1  ;;  %v2819_v20 = vpop.f32.mrb[17].mxu0 }
 0x209   : > { %v3816_v0 = vadd.f32 %v2819_v20, %v1961_v50  ;;  %v3784_v22 = vpop.f32.mrb[18].mxu0  ;;  %2960 = vxpose.xlu0.b32.cont [8/16] (narrow) %v2928_v37, 8  ;;  %v3648_v30 = vpop.f32.mrb[18].mxu1 }
 0x20a   : > { %v3817_v57 = vadd.f32 %v3784_v22, %v3648_v30  ;;  %v1964_v62 = vpop.f32.mrb[19].mxu1  ;;  %v2822_v5 = vpop.f32.mrb[19].mxu0  ;;  %v2939_v13 = vadd.f32 %v3815_v41, %v5132_v3 }
 0x20b   : > { %v3818_v63 = vadd.f32 %v2822_v5, %v1964_v62  ;;  %v2937_v54 = vadd.f32 %v3816_v0, %v5132_v3  ;;  %v2935_v0 = vadd.f32 %v5140_v23, %v5132_v3  ;;  %v2936_v62 = vadd.f32 %v5144_v2, %v5132_v3 }
 0x20c   : > { %v2940_v51 = vadd.f32 %v3817_v57, %v5132_v3 }
 0x20d   : > { %2961 = vxpose.xlu0.b32.cont [9/16] (narrow) %v2929_v49, 8  ;;  %2985 = vxpose.xlu1.b32.start [1/16] (narrow) %v2937_v54, 8  ;;  %v2938_v29 = vadd.f32 %v3818_v63, %v5132_v3 }
 0x20f   : > { %v3651_v36 = vpop.f32.mrb[20].mxu1  ;;  %v3787_v45 = vpop.f32.mrb[20].mxu0 }
 0x210   : > { %v3819_v44 = vadd.f32 %v3787_v45, %v3651_v36  ;;  %v1977_v26 = vpop.f32.mrb[21].mxu1  ;;  %v2835_v8 = vpop.f32.mrb[21].mxu0 }
 0x211   : > { %v3820_v1 = vadd.f32 %v2835_v8, %v1977_v26  ;;  %v3788_v40 = vpop.f32.mrb[22].mxu0  ;;  %2962 = vxpose.xlu0.b32.cont [10/16] (narrow) %v2930_v31, 8  ;;  %2986 = vxpose.xlu1.b32.cont [2/16] (narrow) %v2938_v29, 8  ;;  %v3652_v19 = vpop.f32.mrb[22].mxu1 }
 0x212   : > { %v3821_v16 = vadd.f32 %v3788_v40, %v3652_v19  ;;  %v1980_v52 = vpop.f32.mrb[23].mxu1  ;;  %v2838_v4 = vpop.f32.mrb[23].mxu0  ;;  %v2943_v56 = vadd.f32 %v3819_v44, %v5132_v3 }
 0x213   : > { %v3822_v11 = vadd.f32 %v2838_v4, %v1980_v52  ;;  %v2941_v38 = vadd.f32 %v3820_v1, %v5132_v3 }
 0x214   : > { %v2944_v5 = vadd.f32 %v3821_v16, %v5132_v3 }
 0x215   : > { %2963 = vxpose.xlu0.b32.cont [11/16] (narrow) %v2931_v21, 8  ;;  %2987 = vxpose.xlu1.b32.cont [3/16] (narrow) %v2939_v13, 8  ;;  %v2942_v12 = vadd.f32 %v3822_v11, %v5132_v3 }
 0x217   : > { %v3655_v24 = vpop.f32.mrb[24].mxu1  ;;  %v3791_v9 = vpop.f32.mrb[24].mxu0 }
 0x218   : > { %v3823_v33 = vadd.f32 %v3791_v9, %v3655_v24  ;;  %v1993_v39 = vpop.f32.mrb[25].mxu1  ;;  %v2851_v58 = vpop.f32.mrb[25].mxu0 }
 0x219   : > { %v3824_v42 = vadd.f32 %v2851_v58, %v1993_v39  ;;  %v3792_v15 = vpop.f32.mrb[26].mxu0  ;;  %2964 = vxpose.xlu0.b32.cont [12/16] (narrow) %v2932_v10, 8  ;;  %2988 = vxpose.xlu1.b32.cont [4/16] (narrow) %v2940_v51, 8  ;;  %v3656_v27 = vpop.f32.mrb[26].mxu1 }
 0x21a   : > { %v3825_v6 = vadd.f32 %v3792_v15, %v3656_v27  ;;  %v1996_v7 = vpop.f32.mrb[27].mxu1  ;;  %v2854_v60 = vpop.f32.mrb[27].mxu0  ;;  %v2947_v14 = vadd.f32 %v3823_v33, %v5132_v3 }
 0x21b   : > { %v3826_v28 = vadd.f32 %v2854_v60, %v1996_v7  ;;  %v2945_v46 = vadd.f32 %v3824_v42, %v5132_v3 }
 0x21c   : > { %v2948_v47 = vadd.f32 %v3825_v6, %v5132_v3 }
 0x21d   : > { %2965 = vxpose.xlu0.b32.cont [13/16] (narrow) %v2933_v25, 8  ;;  %2989 = vxpose.xlu1.b32.cont [5/16] (narrow) %v2941_v38, 8  ;;  %v2946_v32 = vadd.f32 %v3826_v28, %v5132_v3 }
 0x21f   : > { %v3659_v18 = vpop.f32.mrb[28].mxu1  ;;  %v3795_v43 = vpop.f32.mrb[28].mxu0 }
 0x220   : > { %v3827_v59 = vadd.f32 %v3795_v43, %v3659_v18  ;;  %v2009_v48 = vpop.f32.mrb[29].mxu1  ;;  %v2867_v35 = vpop.f32.mrb[29].mxu0 }
 0x221   : > { %v3828_v61 = vadd.f32 %v2867_v35, %v2009_v48  ;;  %v3796_v53 = vpop.f32.mrb[30].mxu0  ;;  %2966 = vxpose.xlu0.b32.cont [14/16] (narrow) %v2934_v55, 8  ;;  %2990 = vxpose.xlu1.b32.cont [6/16] (narrow) %v2942_v12, 8  ;;  %v3660_v17 = vpop.f32.mrb[30].mxu1 }
 0x222   : > { %v3829_v34 = vadd.f32 %v3796_v53, %v3660_v17  ;;  %v2012_v37 = vpop.f32.mrb[31].mxu1  ;;  %v2870_v41 = vpop.f32.mrb[31].mxu0  ;;  %v2951_v50 = vadd.f32 %v3827_v59, %v5132_v3 }
 0x223   : > { %v3830_v20 = vadd.f32 %v2870_v41, %v2012_v37  ;;  %v2949_v22 = vadd.f32 %v3828_v61, %v5132_v3 }
 0x224   : > { %v2952_v30 = vadd.f32 %v3829_v34, %v5132_v3 }
 0x225   : > { %2967 = vxpose.xlu0.b32.cont [15/16] (narrow) %v2935_v0, 8  ;;  %2991 = vxpose.xlu1.b32.cont [7/16] (narrow) %v2943_v56, 8  ;;  %v2950_v57 = vadd.f32 %v3830_v20, %v5132_v3 }
 0x229   : > { %2968 = vxpose.xlu0.b32.end [16/16] (narrow) %v2936_v62, 8  ;;  %2992 = vxpose.xlu1.b32.cont [8/16] (narrow) %v2944_v5, 8 }
 0x22d   : > { %2993 = vxpose.xlu1.b32.cont [9/16] (narrow) %v2945_v46, 8 }
 0x231   : > { %2994 = vxpose.xlu1.b32.cont [10/16] (narrow) %v2946_v32, 8 }
 0x235   : > { %2995 = vxpose.xlu1.b32.cont [11/16] (narrow) %v2947_v14, 8 }
 0x239   : > { %2996 = vxpose.xlu1.b32.cont [12/16] (narrow) %v2948_v47, 8 }
 0x23d   : > { %2997 = vxpose.xlu1.b32.cont [13/16] (narrow) %v2949_v22, 8 }
 0x241   : > { %2998 = vxpose.xlu1.b32.cont [14/16] (narrow) %v2950_v57, 8 }
 0x245   : > { %2999 = vxpose.xlu1.b32.cont [15/16] (narrow) %v2951_v50, 8 }
 0x249   : > { %3000 = vxpose.xlu1.b32.end [16/16] (narrow) %v2952_v30, 8 }
 0x26d   : > { %v2969_v23 = vpop.trf.xlu0 }
 0x26e   : > { %3017 = vst [vmem:[%s192_s22] sm:$0xff] %v2969_v23 }
 0x28d   : > { %v3001_v2 = vpop.trf.xlu1 }
 0x28e   : > { %3018 = vst [vmem:[%s192_s22 + $0x8] sm:$0xff] %v3001_v2 }
 0x28f PF: > { %s13_s14 = sadd.s32 1, %s4134_s14   ;;  %s5272_s12 = smov %s4130_s13 }
 0x290   : > { %p10_p5 = scmp.ge.s32.totalorder %s13_s14, 4   ;;  %s5273_s13 = smov %s5275_s15 }
 0x292   :  { %12 = sbr.rel (!%p10_p5) target bundleno = 2 (0x2), region = 71 }

</bundles_post_ra>
